<compile_context>
chip_gen: v6e
topology: v6e:2x2x1
jax: 0.10.0
libtpu: 0.0.40
codegen_flags: <defaults>
</compile_context>

<pallas_src>
import functools

import jax
import jax.numpy as jnp
from jax.experimental import pallas as pl
from jax.experimental.pallas import tpu as pltpu

EPS = 1e-5
PACK = 128   # lane width: every operand / result / packed block is 128 wide


def net_kernel(a_ref, x_ref, sf_ref, p_ref, out_ref, *, off):
    """One batch tile of the whole forward pass; all ops are lane-dense 2-D.

    a_ref  : (TB*N, TB*N) per-tile block-diagonal row-normalized adjacency
    x_ref  : (TB*N, 128)  node features (Din zero-padded to 128 lanes)
    sf_ref : (TB, 128)    per-graph self features (padded to 128 lanes)
    p_ref  : (rows, 128)  packed params/constants; off[name] = (row0, nrows)
    out_ref: (TB, 128)    lane-dense padded output (cols >= dim_out)
    """
    a = a_ref[...]
    x = x_ref[...]
    sf = sf_ref[...]

    def W(name):                       # full-width, 8-row-aligned view
        r0, nr = off[name]
        return p_ref[r0:r0 + nr, :]

    def bias(name):                    # aligned (8,128) load, row-0 broadcast
        r0, _ = off[name]
        return p_ref[r0:r0 + 8, :][0:1, :]

    def dot(u, v):
        return jnp.dot(u, v, preferred_element_type=jnp.float32)

    # ---- GCN layer 1: relu(Linear(mean_neighbors(x)))  (NodeApplyModule) ----
    h = jnp.maximum(dot(dot(a, x), W('w1')) + bias('b1'), 0.0)   # (TBN, 128)
    # ---- GCN layer 2 ----
    h = jnp.maximum(dot(dot(a, h), W('w2')) + bias('b2'), 0.0)   # (TBN, 128)

    # ---- dgl.mean_nodes readout via (TB, TBN) averaging matrix ----
    hg = dot(W('R'), h)                                          # (TB, 128)

    # ---- flatten(outer(hg, sf)) via 0/1 expansion matmuls ----
    # flat[b, i*S+j] = hg[b, i] * sf[b, j]
    flat = dot(hg, W('eh')) * dot(sf, W('es'))                   # (TB, 128)

    # ---- fc1 (+ folded bn1) + relu ----
    x1 = jnp.maximum(dot(flat, W('wf1')) + bias('bf1'), 0.0)     # (TB, 128)
    # TODO(synk): Dropout(p=0.3) is identity in eval mode (not applied here).

    # ---- fc2 (+ folded bn2) + relu ----
    x2 = jnp.maximum(dot(x1, W('wf2')) + bias('bf2'), 0.0)       # (TB, 128)

    # ---- fc3: lane-dense padded output, wrapper slices to (B, dim_out) ----
    out_ref[...] = dot(x2, W('wf3')) + bias('bf3')               # (TB, 128)


def _fold_bn(w, b, g, be, rm, rv):
    """Fold eval-mode BatchNorm1d into the preceding Linear (f32 on host)."""
    scale = g / jnp.sqrt(rv + EPS)            # (1, d)
    return w * scale, (b - rm) * scale + be


def _pad2d(arr, rows, cols=PACK):
    """Zero-pad a 2-D block to (rows, 128)."""
    arr = jnp.asarray(arr, jnp.float32)
    assert arr.shape[0] <= rows and arr.shape[1] <= cols, arr.shape
    return jnp.zeros((rows, cols), jnp.float32).at[
        :arr.shape[0], :arr.shape[1]].set(arr)


def _pack_blocks(blocks):
    """Stack pre-padded (8k, 128) blocks into one buffer; record (row0, rows)."""
    pieces, off, r = [], {}, 0
    for name, arr in blocks.items():
        arr = jnp.asarray(arr, jnp.float32)
        h, w = arr.shape
        assert h % 8 == 0 and w == PACK, (name, arr.shape)
        pieces.append(arr)
        off[name] = (r, h)
        r += h
    return jnp.concatenate(pieces, axis=0), off


def net_forward(a_norm, feat, self_feat, params):
    B, N, Din = feat.shape
    S = self_feat.shape[1]
    H = params['w2'].shape[1]                 # 16 (GCN output width)
    dim_out = params['w_fc3'].shape[1]
    f32 = jnp.float32

    # Batch tile: TB graphs per grid step, sized so TB*N == 128 lane-dense rows.
    assert 128 % N == 0, "demo tiling assumes N divides 128"
    TB = 128 // N
    assert TB % 8 == 0, "TB must be a multiple of 8 for unmasked output rows"
    TBN = TB * N
    num_tiles = pl.cdiv(B, TB)
    Bp = num_tiles * TB
    assert Din <= PACK and S <= PACK and H * S <= PACK and dim_out <= PACK

    # Pad batch to a multiple of TB (dummy graphs are all-zero; sliced off).
    a_pad = jnp.zeros((Bp, N, N), f32).at[:B].set(a_norm.astype(f32))
    feat_pad = jnp.zeros((Bp, N, PACK), f32).at[:B, :, :Din].set(feat.astype(f32))
    sf_pad = jnp.zeros((Bp, PACK), f32).at[:B, :S].set(self_feat.astype(f32))

    # Per-tile block-diagonal adjacency, (num_tiles*TBN, TBN): linear in B.
    a4 = a_pad.reshape(num_tiles, TB, N, N)
    eye = jnp.eye(TB, dtype=f32)
    a_bd = (a4[:, :, :, None, :] * eye[None, :, None, :, None]
            ).reshape(num_tiles * TBN, TBN)
    feat2d = feat_pad.reshape(Bp * N, PACK)

    # Per-tile mean-readout matrix R[g, g*N + n] = 1/N (same for every tile).
    R = ((jnp.arange(TBN)[None, :] // N)
         == jnp.arange(TB)[:, None]).astype(f32) / N            # (TB, 128)

    # 0/1 expansion matrices for flat[b, i*S+j] = hg[b,i] * sf[b,j].
    k = jnp.arange(H * S)
    E_h = jnp.zeros((PACK, PACK), f32).at[k // S, k].set(1.0)
    E_s = jnp.zeros((PACK, PACK), f32).at[k % S, k].set(1.0)

    # Fold eval-mode BatchNorms into fc1/fc2.
    wf1, bf1 = _fold_bn(params['w_fc1'], params['b_fc1'],
                        params['g1'], params['be1'], params['rm1'], params['rv1'])
    wf2, bf2 = _fold_bn(params['w_fc2'], params['b_fc2'],
                        params['g2'], params['be2'], params['rm2'], params['rv2'])

    pack, off = _pack_blocks(dict(
        w1=_pad2d(params['w1'], PACK), b1=_pad2d(params['b1'], 8),
        w2=_pad2d(params['w2'], PACK), b2=_pad2d(params['b2'], 8),
        R=_pad2d(R, TB),
        eh=E_h, es=E_s,
        wf1=_pad2d(wf1, PACK), bf1=_pad2d(bf1, 8),
        wf2=_pad2d(wf2, PACK), bf2=_pad2d(bf2, 8),
        wf3=_pad2d(params['w_fc3'], PACK), bf3=_pad2d(params['b_fc3'], 8),
    ))

    out = pl.pallas_call(
        functools.partial(net_kernel, off=off),
        out_shape=jax.ShapeDtypeStruct((Bp, PACK), jnp.float32),
        grid=(num_tiles,),
        in_specs=[
            pl.BlockSpec((TBN, TBN), lambda i: (i, 0)),    # adjacency tile
            pl.BlockSpec((TBN, PACK), lambda i: (i, 0)),   # feature tile
            pl.BlockSpec((TB, PACK), lambda i: (i, 0)),    # self_feat tile
            pl.BlockSpec(pack.shape, lambda i: (0, 0)),    # params: VMEM-resident
        ],
        out_specs=pl.BlockSpec((TB, PACK), lambda i: (i, 0)),
        compiler_params=pltpu.CompilerParams(
            dimension_semantics=("parallel",),
            vmem_limit_bytes=32 * 1024 * 1024),
    )(a_bd, feat2d, sf_pad, pack)
    return out[:B, :dim_out]


def make_params(key, dim_in, dim_out, dim_self_feat):
    ks = jax.random.split(key, 7)
    S = dim_self_feat

    def lin(k, din, dout):
        kw, kb = jax.random.split(k)
        w = jax.random.normal(kw, (din, dout), jnp.float32) * 0.1
        b = jax.random.normal(kb, (1, dout), jnp.float32) * 0.1
        return w, b

    w1, b1 = lin(ks[0], dim_in, 32)          # gc1.apply_mod.linear
    w2, b2 = lin(ks[1], 32, 16)              # gc2.apply_mod.linear
    w_fc1, b_fc1 = lin(ks[2], 16 * S, 64)    # fc1
    w_fc2, b_fc2 = lin(ks[3], 64, 16)        # fc2
    w_fc3, b_fc3 = lin(ks[4], 16, dim_out)   # fc3

    def bn(k, d):  # non-trivial BN stats so the host-side fold is exercised
        kg, kb, km, kv = jax.random.split(k, 4)
        g = 1.0 + 0.1 * jax.random.normal(kg, (1, d), jnp.float32)
        be = 0.1 * jax.random.normal(kb, (1, d), jnp.float32)
        rm = 0.1 * jax.random.normal(km, (1, d), jnp.float32)
        rv = jnp.abs(1.0 + 0.1 * jax.random.normal(kv, (1, d), jnp.float32))
        return g, be, rm, rv

    g1, be1, rm1, rv1 = bn(ks[5], 64)
    g2, be2, rm2, rv2 = bn(ks[6], 16)

    return dict(w1=w1, b1=b1, w2=w2, b2=b2,
                w_fc1=w_fc1, b_fc1=b_fc1, w_fc2=w_fc2, b_fc2=b_fc2,
                w_fc3=w_fc3, b_fc3=b_fc3,
                g1=g1, be1=be1, rm1=rm1, rv1=rv1,
                g2=g2, be2=be2, rm2=rm2, rv2=rv2)


def reference_forward(a_norm, feat, self_feat, params):
    """Plain-JAX reference mirroring the PyTorch forward (eval mode)."""
    h = jnp.einsum('bij,bjd->bid', a_norm, feat)
    h = jax.nn.relu(jnp.einsum('bnd,do->bno', h, params['w1']) + params['b1'][0])
    h = jnp.einsum('bij,bjd->bid', a_norm, h)
    h = jax.nn.relu(jnp.einsum('bnd,do->bno', h, params['w2']) + params['b2'][0])
    hg = jnp.mean(h, axis=1)                                   # (B, 16)
    outer = hg[:, :, None] * self_feat[:, None, :]             # (B,16,1)x(B,1,S)
    flat = outer.reshape(outer.shape[0], -1)                   # (B, 16*S)
    x = flat @ params['w_fc1'] + params['b_fc1'][0]
    x = (x - params['rm1'][0]) / jnp.sqrt(params['rv1'][0] + EPS) * params['g1'][0] + params['be1'][0]
    x = jax.nn.relu(x)
    x = x @ params['w_fc2'] + params['b_fc2'][0]
    x = (x - params['rm2'][0]) / jnp.sqrt(params['rv2'][0] + EPS) * params['g2'][0] + params['be2'][0]
    x = jax.nn.relu(x)
    return x @ params['w_fc3'] + params['b_fc3'][0]


if __name__ == "__main__":
    B, N = 32, 8           # 32 graphs, 8 nodes each -> 2 grid tiles of 16 graphs
    dim_in, dim_out, dim_self_feat = 6, 3, 5

    key = jax.random.PRNGKey(0)
    k_adj, k_feat, k_sf, k_par = jax.random.split(key, 4)

    # Random graph with guaranteed self-loops (in-degree >= 1, so the DGL mean
    # reduce has no empty-mailbox corner case).
    adj = (jax.random.uniform(k_adj, (B, N, N)) < 0.4).astype(jnp.float32)
    adj = jnp.maximum(adj, jnp.eye(N, dtype=jnp.float32)[None, :, :])
    deg = jnp.sum(adj, axis=-1, keepdims=True)
    a_norm = adj / deg                                          # mean aggregation

    feat = jax.random.normal(k_feat, (B, N, dim_in), jnp.float32)
    self_feat = jax.random.normal(k_sf, (B, dim_self_feat), jnp.float32)

    params = make_params(k_par, dim_in, dim_out, dim_self_feat)

    out = net_forward(a_norm, feat, self_feat, params)
    out = jax.block_until_ready(out)

    ref = reference_forward(a_norm, feat, self_feat, params)
    assert out.shape == (B, dim_out)
    assert jnp.allclose(out, ref, rtol=1e-3, atol=1e-3), (out, ref)

    print("KERNEL_OK")
</pallas_src>

<mosaic_0001>
module attributes {stable_mosaic.version = 11 : i64} {
  func.func @net_kernel(%arg0: i32, %arg1: memref<128x128xf32, #tpu.memory_space<vmem>>, %arg2: memref<128x128xf32, #tpu.memory_space<vmem>>, %arg3: memref<16x128xf32, #tpu.memory_space<vmem>>, %arg4: memref<952x128xf32, #tpu.memory_space<vmem>>, %arg5: memref<16x128xf32, #tpu.memory_space<vmem>>) attributes {dimension_semantics = [#tpu.dimension_semantics<parallel>], iteration_bounds = array<i64: 2>, scalar_prefetch = 0 : i64, scratch_operands = 0 : i64, tpu.core_type = #tpu.core_type<tc>, window_params = [{transform_indices = @transform_0, window_bounds = array<i64: 128, 128>}, {transform_indices = @transform_1, window_bounds = array<i64: 128, 128>}, {transform_indices = @transform_2, window_bounds = array<i64: 16, 128>}, {pipeline_mode = #tpu.pipeline_mode<synchronous>, transform_indices = @transform_3, window_bounds = array<i64: 952, 128>}, {transform_indices = @transform_4, window_bounds = array<i64: 16, 128>}]} {
    %c0 = arith.constant 0 : index
    %c0_0 = arith.constant 0 : index
    %0 = vector.load %arg1[%c0, %c0_0] : memref<128x128xf32, #tpu.memory_space<vmem>>, vector<128x128xf32>
    %c0_1 = arith.constant 0 : index
    %c0_2 = arith.constant 0 : index
    %1 = vector.load %arg2[%c0_1, %c0_2] : memref<128x128xf32, #tpu.memory_space<vmem>>, vector<128x128xf32>
    %c0_3 = arith.constant 0 : index
    %c0_4 = arith.constant 0 : index
    %2 = vector.load %arg3[%c0_3, %c0_4] : memref<16x128xf32, #tpu.memory_space<vmem>>, vector<16x128xf32>
    %cst = arith.constant dense<0.000000e+00> : vector<128x128xf32>
    %3 = tpu.matmul %0, %1, %cst {dimension_numbers = #tpu.dot_dimension_numbers<[1], [0], [0], [1], [0, 0, 1, 1], [], []>} : vector<128x128xf32>, vector<128x128xf32>, vector<128x128xf32> -> vector<128x128xf32>
    %c0_5 = arith.constant 0 : index
    %c0_6 = arith.constant 0 : index
    %4 = vector.load %arg4[%c0_5, %c0_6] : memref<952x128xf32, #tpu.memory_space<vmem>>, vector<128x128xf32>
    %cst_7 = arith.constant dense<0.000000e+00> : vector<128x128xf32>
    %5 = tpu.matmul %3, %4, %cst_7 {dimension_numbers = #tpu.dot_dimension_numbers<[1], [0], [0], [1], [0, 0, 1, 1], [], []>} : vector<128x128xf32>, vector<128x128xf32>, vector<128x128xf32> -> vector<128x128xf32>
    %c128 = arith.constant 128 : index
    %c0_8 = arith.constant 0 : index
    %6 = vector.load %arg4[%c128, %c0_8] : memref<952x128xf32, #tpu.memory_space<vmem>>, vector<8x128xf32>
    %7 = vector.extract_strided_slice %6 {offsets = [0, 0], sizes = [1, 128], strides = [1, 1]} : vector<8x128xf32> to vector<1x128xf32>
    %8 = vector.broadcast %7 : vector<1x128xf32> to vector<128x128xf32>
    %9 = arith.addf %5, %8 : vector<128x128xf32>
    %cst_9 = arith.constant 0.000000e+00 : f32
    %10 = vector.broadcast %cst_9 : f32 to vector<128x128xf32>
    %11 = arith.maximumf %9, %10 : vector<128x128xf32>
    %cst_10 = arith.constant dense<0.000000e+00> : vector<128x128xf32>
    %12 = tpu.matmul %0, %11, %cst_10 {dimension_numbers = #tpu.dot_dimension_numbers<[1], [0], [0], [1], [0, 0, 1, 1], [], []>} : vector<128x128xf32>, vector<128x128xf32>, vector<128x128xf32> -> vector<128x128xf32>
    %c136 = arith.constant 136 : index
    %c0_11 = arith.constant 0 : index
    %13 = vector.load %arg4[%c136, %c0_11] : memref<952x128xf32, #tpu.memory_space<vmem>>, vector<128x128xf32>
    %cst_12 = arith.constant dense<0.000000e+00> : vector<128x128xf32>
    %14 = tpu.matmul %12, %13, %cst_12 {dimension_numbers = #tpu.dot_dimension_numbers<[1], [0], [0], [1], [0, 0, 1, 1], [], []>} : vector<128x128xf32>, vector<128x128xf32>, vector<128x128xf32> -> vector<128x128xf32>
    %c264 = arith.constant 264 : index
    %c0_13 = arith.constant 0 : index
    %15 = vector.load %arg4[%c264, %c0_13] : memref<952x128xf32, #tpu.memory_space<vmem>>, vector<8x128xf32>
    %16 = vector.extract_strided_slice %15 {offsets = [0, 0], sizes = [1, 128], strides = [1, 1]} : vector<8x128xf32> to vector<1x128xf32>
    %17 = vector.broadcast %16 : vector<1x128xf32> to vector<128x128xf32>
    %18 = arith.addf %14, %17 : vector<128x128xf32>
    %cst_14 = arith.constant 0.000000e+00 : f32
    %19 = vector.broadcast %cst_14 : f32 to vector<128x128xf32>
    %20 = arith.maximumf %18, %19 : vector<128x128xf32>
    %c272 = arith.constant 272 : index
    %c0_15 = arith.constant 0 : index
    %21 = vector.load %arg4[%c272, %c0_15] : memref<952x128xf32, #tpu.memory_space<vmem>>, vector<16x128xf32>
    %cst_16 = arith.constant dense<0.000000e+00> : vector<16x128xf32>
    %22 = tpu.matmul %21, %20, %cst_16 {dimension_numbers = #tpu.dot_dimension_numbers<[1], [0], [0], [1], [0, 0, 1, 1], [], []>} : vector<16x128xf32>, vector<128x128xf32>, vector<16x128xf32> -> vector<16x128xf32>
    %c288 = arith.constant 288 : index
    %c0_17 = arith.constant 0 : index
    %23 = vector.load %arg4[%c288, %c0_17] : memref<952x128xf32, #tpu.memory_space<vmem>>, vector<128x128xf32>
    %cst_18 = arith.constant dense<0.000000e+00> : vector<16x128xf32>
    %24 = tpu.matmul %22, %23, %cst_18 {dimension_numbers = #tpu.dot_dimension_numbers<[1], [0], [0], [1], [0, 0, 1, 1], [], []>} : vector<16x128xf32>, vector<128x128xf32>, vector<16x128xf32> -> vector<16x128xf32>
    %c416 = arith.constant 416 : index
    %c0_19 = arith.constant 0 : index
    %25 = vector.load %arg4[%c416, %c0_19] : memref<952x128xf32, #tpu.memory_space<vmem>>, vector<128x128xf32>
    %cst_20 = arith.constant dense<0.000000e+00> : vector<16x128xf32>
    %26 = tpu.matmul %2, %25, %cst_20 {dimension_numbers = #tpu.dot_dimension_numbers<[1], [0], [0], [1], [0, 0, 1, 1], [], []>} : vector<16x128xf32>, vector<128x128xf32>, vector<16x128xf32> -> vector<16x128xf32>
    %27 = arith.mulf %24, %26 : vector<16x128xf32>
    %c544 = arith.constant 544 : index
    %c0_21 = arith.constant 0 : index
    %28 = vector.load %arg4[%c544, %c0_21] : memref<952x128xf32, #tpu.memory_space<vmem>>, vector<128x128xf32>
    %cst_22 = arith.constant dense<0.000000e+00> : vector<16x128xf32>
    %29 = tpu.matmul %27, %28, %cst_22 {dimension_numbers = #tpu.dot_dimension_numbers<[1], [0], [0], [1], [0, 0, 1, 1], [], []>} : vector<16x128xf32>, vector<128x128xf32>, vector<16x128xf32> -> vector<16x128xf32>
    %c672 = arith.constant 672 : index
    %c0_23 = arith.constant 0 : index
    %30 = vector.load %arg4[%c672, %c0_23] : memref<952x128xf32, #tpu.memory_space<vmem>>, vector<8x128xf32>
    %31 = vector.extract_strided_slice %30 {offsets = [0, 0], sizes = [1, 128], strides = [1, 1]} : vector<8x128xf32> to vector<1x128xf32>
    %32 = vector.broadcast %31 : vector<1x128xf32> to vector<16x128xf32>
    %33 = arith.addf %29, %32 : vector<16x128xf32>
    %cst_24 = arith.constant 0.000000e+00 : f32
    %34 = vector.broadcast %cst_24 : f32 to vector<16x128xf32>
    %35 = arith.maximumf %33, %34 : vector<16x128xf32>
    %c680 = arith.constant 680 : index
    %c0_25 = arith.constant 0 : index
    %36 = vector.load %arg4[%c680, %c0_25] : memref<952x128xf32, #tpu.memory_space<vmem>>, vector<128x128xf32>
    %cst_26 = arith.constant dense<0.000000e+00> : vector<16x128xf32>
    %37 = tpu.matmul %35, %36, %cst_26 {dimension_numbers = #tpu.dot_dimension_numbers<[1], [0], [0], [1], [0, 0, 1, 1], [], []>} : vector<16x128xf32>, vector<128x128xf32>, vector<16x128xf32> -> vector<16x128xf32>
    %c808 = arith.constant 808 : index
    %c0_27 = arith.constant 0 : index
    %38 = vector.load %arg4[%c808, %c0_27] : memref<952x128xf32, #tpu.memory_space<vmem>>, vector<8x128xf32>
    %39 = vector.extract_strided_slice %38 {offsets = [0, 0], sizes = [1, 128], strides = [1, 1]} : vector<8x128xf32> to vector<1x128xf32>
    %40 = vector.broadcast %39 : vector<1x128xf32> to vector<16x128xf32>
    %41 = arith.addf %37, %40 : vector<16x128xf32>
    %cst_28 = arith.constant 0.000000e+00 : f32
    %42 = vector.broadcast %cst_28 : f32 to vector<16x128xf32>
    %43 = arith.maximumf %41, %42 : vector<16x128xf32>
    %c816 = arith.constant 816 : index
    %c0_29 = arith.constant 0 : index
    %44 = vector.load %arg4[%c816, %c0_29] : memref<952x128xf32, #tpu.memory_space<vmem>>, vector<128x128xf32>
    %cst_30 = arith.constant dense<0.000000e+00> : vector<16x128xf32>
    %45 = tpu.matmul %43, %44, %cst_30 {dimension_numbers = #tpu.dot_dimension_numbers<[1], [0], [0], [1], [0, 0, 1, 1], [], []>} : vector<16x128xf32>, vector<128x128xf32>, vector<16x128xf32> -> vector<16x128xf32>
    %c944 = arith.constant 944 : index
    %c0_31 = arith.constant 0 : index
    %46 = vector.load %arg4[%c944, %c0_31] : memref<952x128xf32, #tpu.memory_space<vmem>>, vector<8x128xf32>
    %47 = vector.extract_strided_slice %46 {offsets = [0, 0], sizes = [1, 128], strides = [1, 1]} : vector<8x128xf32> to vector<1x128xf32>
    %48 = vector.broadcast %47 : vector<1x128xf32> to vector<16x128xf32>
    %49 = arith.addf %45, %48 : vector<16x128xf32>
    %c0_32 = arith.constant 0 : index
    %c0_33 = arith.constant 0 : index
    %50 = vector.load %arg5[%c0_32, %c0_33] : memref<16x128xf32, #tpu.memory_space<vmem>>, vector<16x128xf32>
    tpu.vector_store %arg5[%c0_32, %c0_33], %49 {strides = array<i32>} : memref<16x128xf32, #tpu.memory_space<vmem>>, vector<16x128xf32>,
    return
  }
  func.func @transform_0(%arg0: i32) -> (i32, i32) {
    %c0_i32 = arith.constant 0 : i32
    %c0_i32_0 = arith.constant 0 : i32
    return %arg0, %c0_i32 : i32, i32
  }
  func.func @transform_1(%arg0: i32) -> (i32, i32) {
    %c0_i32 = arith.constant 0 : i32
    %c0_i32_0 = arith.constant 0 : i32
    return %arg0, %c0_i32 : i32, i32
  }
  func.func @transform_2(%arg0: i32) -> (i32, i32) {
    %c0_i32 = arith.constant 0 : i32
    %c0_i32_0 = arith.constant 0 : i32
    return %arg0, %c0_i32 : i32, i32
  }
  func.func @transform_3(%arg0: i32) -> (i32, i32) {
    %c0_i32 = arith.constant 0 : i32
    %c0_i32_0 = arith.constant 0 : i32
    %c0_i32_1 = arith.constant 0 : i32
    return %c0_i32, %c0_i32_0 : i32, i32
  }
  func.func @transform_4(%arg0: i32) -> (i32, i32) {
    %c0_i32 = arith.constant 0 : i32
    %c0_i32_0 = arith.constant 0 : i32
    return %arg0, %c0_i32 : i32, i32
  }
}

</mosaic_0001>

<bundles_post_ra>
// kernel: tpu_custom_call.1
= control target key start
LH: loop header
LB: loop body
LE: loop exit
PB: predicated region body
PF: predicated region fallthrough
CT: control target
= control target key end

     0   :  { %s3089_s0 = inlined_call_operand.hbm [shape: f32[256,128], index: 0, kind: input, shape index: {}]   ;;  %s3090_s1 = inlined_call_operand.hbm [shape: f32[256,128], index: 1, kind: input, shape index: {}]   ;;  %s3091_s2 = inlined_call_operand.hbm [shape: f32[32,128], index: 2, kind: input, shape index: {}]   ;;  %s3092_s3 = inlined_call_operand.hbm [shape: f32[952,128], index: 3, kind: input, shape index: {}]   ;;  %s3093_s4 = inlined_call_operand.hbm [shape: f32[32,128], index: 4, kind: output, shape index: {}]  }
   0x1   :  { %3104 = sst [smem:[#allocation16_spill]] %s3090_s1 }
   0x2   :  { %9 = vsyncpa [#allocation3], 0 }
   0x3   :  { %11 = vsyncpa [#allocation3 + $0x1], 0 }
   0x4   :  { %12 = vsyncpa [#allocation6], 0 }
   0x5   :  { %14 = vsyncpa [#allocation6 + $0x1], 0 }
   0x6   :  { %15 = vsyncpa [#allocation9], 0 }
   0x7   :  { %16 = vsyncpa [#allocation4], 0 }
   0x8   :  { %18 = vsyncpa [#allocation4 + $0x1], 0  ;;  %s2682_s15 = smov 0   ;;  %s2684_s16 = smov 0  }
   0x9   :  { %s2686_s17 = smov 0   ;;  %s2688_s18 = smov 0  }
   0xa LB: > { %s2703_s19 = sadd.s32 1, %s2646_s18   ;;  %s31_s20 = sadd.s32 1, %s2642_s17  ;;  %s2646_s18 = sphi %s2688_s18, %s3130_s18   ;;  %s2642_s17 = sphi %s2686_s17, %s3129_s17   ;;  %s2638_s16 = sphi %s2684_s16, %s3128_s16   ;;  %s2634_s15 = sphi %s2682_s15, %s3127_s15  }
   0xb   : > { %s28_s21 = ssub.s32 %s2646_s18, %s2703_s19  ;;  %p3094_p0 = scmp.ne.s32.totalorder %s2642_s17, %s2638_s16 }
   0xc   : > { %p29_p1 = scmp.eq.s32.totalorder %s28_s21, 0  ;;  %p39_p2 = scmp.eq.s32.totalorder %s2646_s18, 0 }
   0xd   : > { %p2424_p5 = scmp.lt.s32.totalorder %s2646_s18, 2  ;;  %s2720_s23 = sand.u32 1, %s2642_s17  }
   0xe   : > { %s2712_s22 = scalar_select %p29_p1, %s2642_s17, %s31_s20  }
   0xf   : > { %p40_p3 = por %p39_p2, %p3094_p0  ;;  %s1699_s24 = sshll.u32 %s2720_s23, 7 }
  0x10   : > { %3105 = sst [smem:[#allocation15_spill]] %s2712_s22  ;;  %s1719_s25 = sshll.u32 %s2646_s18, 11 }
  0x11   : > { %p2724_p6 = pnand %p2424_p5, %p40_p3  ;;  %s201_s27 = sand.u32 1, %s2646_s18  }
  0x12   : > { %s3107_s1 = sld [smem:[#allocation16_spill]]  ;;  %s205_s5 = scalar_lea.vmem [#allocation5], %s1699_s24 }
  0x13   : > { %s212_s6 = sshll.u32 %s205_s5, 4  ;;  %s2740_s7 = scalar_lea.sflag [#allocation6], %s201_s27  ;;  %s2738_s6 = int_to_ptr.vmem [resolvable:$true] %s212_s6 }
  0x14   : > { %p2746_p8 = pneg %p2724_p6 }
  0x18   : > { %s2734_s30 = scalar_lea.hbm %s3107_s1, %s1719_s25  ;;  %s2469_s12 = scalar_lea.hbm %s3107_s1, 4096 }
  0x19   : > { %s2464_s8 = scalar_lea.hbm %s2734_s30, 2048  ;;  %p2470_p11 = scmp.lt.s32.totalorder %s2734_s30, %s3107_s1 }
  0x1a   : > { %p2465_p7 = scmp.ne.s32.totalorder %s2734_s30, %s2464_s8  ;;  %p2471_p12 = scmp.lt.s32.totalorder %s2469_s12, %s2464_s8 }
  0x1c   : > { %p2467_p9 = pnand %p2746_p8, %p2465_p7  ;;  %p2472_p13 = por %p2471_p12, %p2470_p11 }
  0x1e   : > { %p2468_p10 = pneg %p2467_p9 }
  0x20   : > { %p2473_p1 = pnand %p2472_p13, %p2468_p10 }
  0x22   : > { %2476 = shalt.err (!%p2473_p1)
}
  0x23   : > { %s2477_s20 = scalar_lea.vmem %s2738_s6, 2048  ;;  %s2648_s21 = smov [#allocation5]  }
  0x24   : > { %p2478_p2 = scmp.ne.s32.totalorder %s2738_s6, %s2477_s20  ;;  %s2482_s27 = sshll.u32 %s2648_s21, 4  ;;  %s2483_s27 = int_to_ptr.vmem [resolvable:$false] %s2482_s27 }
  0x25   : > { %s2484_s28 = scalar_lea.vmem %s2483_s27, 4096  ;;  %p2485_p7 = scmp.lt.s32.totalorder %s2738_s6, %s2483_s27 }
  0x26   : > { %p2480_p3 = pnand %p2478_p2, %p2746_p8  ;;  %p2486_p9 = scmp.lt.s32.totalorder %s2484_s28, %s2477_s20 }
  0x28   : > { %p2481_p5 = pneg %p2480_p3  ;;  %p2487_p4 = por %p2486_p9, %p2485_p7 }
  0x2a   : > { %p2488_p0 = pnand %p2487_p4, %p2481_p5 }
  0x2c   : > { %2491 = shalt.err (!%p2488_p0)
}
  0x2d   : > { %s3095_s29 = smov 128   ;;  %s3097_s5 = smov 8  }
  0x2e   : > { %2415 = dma.hbm_to_vmem [thread:$0]  (!%p2724_p6), %s2734_s30, 2048, %s2738_s6, %s2740_s7, %s3095_s29, %s3095_s29, %s3097_s5  }
  0x2f   : > { %s2773_s8 = sadd.s32 4294967295, %s2646_s18   ;;  %s1695_s10 = sadd.s32 4294967294, %s2646_s18  }
  0x30   : > { %p44_p0 = scmp.ne.s32.totalorder %s2638_s16, %s2634_s15  ;;  %p3099_p4 = scmp.eq.s32.totalorder %s2773_s8, 0 }
  0x31   : > { %p141_p10 = scmp.eq.s32.totalorder %s2773_s8, 1  ;;  %p147_p11 = scmp.eq.s32.totalorder %s1695_s10, 1 }
  0x32   : > { %p2782_p12 = por %p3099_p4, %p44_p0  ;;  %p1696_p13 = scmp.ge.s32.totalorder %s2646_s18, 1 }
  0x33   : > { %p3110_p1 = scmp.ne.s32.totalorder %s2642_s17, %s2638_s16  ;;  %p2794_p3 = por %p147_p11, %p44_p0 }
  0x34   : > { %s3109_s11 = scalar_select %p2782_p12, 1, 0 }
  0x35   : > { %p2790_p2 = por %p141_p10, %p3110_p1  ;;  %p154_p5 = scmp.lt.s32.totalorder %s2646_s18, 3 }
  0x36   : > { %s3112_s6 = scalar_select %p2794_p3, 1, 0 }
  0x37   : > { %s3111_s30 = scalar_select %p2790_p2, 1, 0 }
  0x38   : > { %p2799_p7 = pnand %p1696_p13, %p154_p5  ;;  %s2651_s13 = smov [#allocation8]  }
  0x39   : > { %s166_s14 = sshll.u32 %s2651_s13, 4  ;;  %s2812_s27 = scalar_lea.hbm %s3089_s0, %s1719_s25  ;;  %s2803_s14 = int_to_ptr.vmem [resolvable:$true] %s166_s14 }
  0x3a   : > { %s3113_s12 = scalar_select %p2799_p7, 1, 0 }
  0x3b   : > { %p2405_p9 = pneg %p2799_p7  ;;  %s184_s28 = scalar_lea.vmem [#allocation2], %s1699_s24 }
  0x3c   : > { %s191_s10 = sshll.u32 %s184_s28, 4  ;;  %s181_s5 = scalar_lea.sflag [#allocation3], %s2720_s23  ;;  %s2823_s10 = int_to_ptr.vmem [resolvable:$true] %s191_s10 }
  0x3d   : > { %p2819_p0 = pnand %p2405_p9, %p3099_p4  ;;  %s2492_s1 = scalar_lea.hbm %s2812_s27, 2048 }
  0x3e   : > { %p2493_p10 = scmp.ne.s32.totalorder %s2812_s27, %s2492_s1  ;;  %s2497_s21 = scalar_lea.hbm %s3089_s0, 4096 }
  0x3f   : > { %s3114_s13 = scalar_select %p2819_p0, 1, 0 }
  0x40   : > { %p2495_p11 = pnand %p2493_p10, %p2746_p8  ;;  %p2498_p1 = scmp.lt.s32.totalorder %s2812_s27, %s3089_s0 }
  0x41   : > { %p2499_p5 = scmp.lt.s32.totalorder %s2497_s21, %s2492_s1 }
  0x42   : > { %p2496_p13 = pneg %p2495_p11 }
  0x43   : > { %p2500_p9 = por %p2499_p5, %p2498_p1 }
  0x45   : > { %p2501_p4 = pnand %p2500_p9, %p2496_p13 }
  0x47   : > { %2504 = shalt.err (!%p2501_p4)
}
  0x48   : > { %s2505_s29 = scalar_lea.vmem %s2823_s10, 2048  ;;  %s2652_s22 = smov [#allocation2]  }
  0x49   : > { %p2506_p3 = scmp.ne.s32.totalorder %s2823_s10, %s2505_s29  ;;  %s2510_s25 = sshll.u32 %s2652_s22, 4  ;;  %s2511_s25 = int_to_ptr.vmem [resolvable:$false] %s2510_s25 }
  0x4a   : > { %s2512_s20 = scalar_lea.vmem %s2511_s25, 4096  ;;  %p2513_p2 = scmp.lt.s32.totalorder %s2823_s10, %s2511_s25 }
  0x4b   : > { %p2508_p10 = pnand %p2506_p3, %p2746_p8  ;;  %p2514_p12 = scmp.lt.s32.totalorder %s2512_s20, %s2505_s29 }
  0x4d   : > { %p2509_p11 = pneg %p2508_p10  ;;  %p2515_p7 = por %p2514_p12, %p2513_p2 }
  0x4f   : > { %p2516_p0 = pnand %p2515_p7, %p2509_p11 }
  0x51   : > { %2519 = shalt.err (!%p2516_p0)
}
  0x52   : > { %s3115_s1 = smov 8   ;;  %s3116_s21 = smov 128  }
  0x53   : > { %2412 = dma.hbm_to_vmem [thread:$0]  (!%p2724_p6), %s2812_s27, 2048, %s2823_s10, %s181_s5, %s3116_s21, %s3116_s21, %s3115_s1  }
  0x54   : > { %p3117_p4 = scmp.ne.s32.totalorder %s3114_s13, 0  ;;  %s2531_s22 = scalar_lea.vmem %s2803_s14, 15232 }
  0x55   : > { %p2532_p13 = scmp.ne.s32.totalorder %s2803_s14, %s2531_s22  ;;  %p2539_p2 = scmp.lt.s32.totalorder %s2803_s14, %s2803_s14 }
  0x56   : > { %p2522_p3 = pneg %p3117_p4  ;;  %p2540_p7 = scmp.lt.s32.totalorder %s2531_s22, %s2531_s22 }
  0x58   : > { %p2534_p1 = pnand %p2532_p13, %p2522_p3  ;;  %p2541_p0 = por %p2540_p7, %p2539_p2 }
  0x5a   : > { %p2535_p12 = pneg %p2534_p1 }
  0x5c   : > { %p2542_p5 = pnand %p2541_p0, %p2535_p12 }
  0x5e   : > { %2545 = shalt.err (!%p2542_p5)
}
  0x5f   : > { %2408 = dma.hbm_to_vmem [thread:$0]  (!%p3117_p4), %s3092_s3, 15232, %s2803_s14, [#allocation9], %s3116_s21, %s3116_s21, %s3115_s1  }
  0x60   : > { %s1721_s27 = sshll.u32 %s2646_s18, 8  ;;  %s3118_s10 = sshll.u32 %s2720_s23, 4 }
  0x61   : > { %s226_s24 = scalar_lea.vmem [#allocation7], %s3118_s10  ;;  %s2870_s22 = scalar_lea.hbm %s3091_s2, %s1721_s27 }
  0x62   : > { %s233_s28 = sshll.u32 %s226_s24, 4  ;;  %s2546_s13 = scalar_lea.hbm %s2870_s22, 256  ;;  %s234_s28 = int_to_ptr.vmem [resolvable:$true] %s233_s28 }
  0x63   : > { %p2547_p9 = scmp.ne.s32.totalorder %s2870_s22, %s2546_s13  ;;  %s2551_s23 = scalar_lea.hbm %s3091_s2, 512 }
  0x64   : > { %p2552_p4 = scmp.lt.s32.totalorder %s2870_s22, %s3091_s2  ;;  %p2553_p3 = scmp.lt.s32.totalorder %s2551_s23, %s2546_s13 }
  0x65   : > { %p2549_p10 = pnand %p2547_p9, %p2746_p8 }
  0x66   : > { %p2554_p13 = por %p2553_p3, %p2552_p4 }
  0x67   : > { %p2550_p11 = pneg %p2549_p10 }
  0x69   : > { %p2555_p1 = pnand %p2554_p13, %p2550_p11 }
  0x6b   : > { %2558 = shalt.err (!%p2555_p1)
}
  0x6c   : > { %s2559_s27 = scalar_lea.vmem %s234_s28, 256  ;;  %s2653_s24 = smov [#allocation7]  }
  0x6d   : > { %p2560_p12 = scmp.ne.s32.totalorder %s234_s28, %s2559_s27  ;;  %s2564_s25 = sshll.u32 %s2653_s24, 4  ;;  %s2565_s25 = int_to_ptr.vmem [resolvable:$false] %s2564_s25 }
  0x6e   : > { %s2566_s20 = scalar_lea.vmem %s2565_s25, 512  ;;  %p2567_p0 = scmp.lt.s32.totalorder %s234_s28, %s2565_s25 }
  0x6f   : > { %p2562_p2 = pnand %p2560_p12, %p2746_p8  ;;  %p2568_p5 = scmp.lt.s32.totalorder %s2566_s20, %s2559_s27 }
  0x71   : > { %p2563_p7 = pneg %p2562_p2  ;;  %p2569_p9 = por %p2568_p5, %p2567_p0 }
  0x73   : > { %p2570_p10 = pnand %p2569_p9, %p2563_p7 }
  0x75   : > { %2573 = shalt.err (!%p2570_p10)
}
  0x76   : > { %2418 = dma.hbm_to_vmem [thread:$0]  (!%p2724_p6), %s2870_s22, 256, %s234_s28, %s2740_s7, %s3116_s21, %s3116_s21, %s3115_s1  }
  0x77   : > { %p3119_p8 = scmp.ne.s32.totalorder %s3113_s12, 0 }
  0x78   : > { %s2895_s9 = sand.u32 (!%p3119_p8), 1, %s2638_s16   ;;  %p3120_p11 = scmp.ne.s32.totalorder (!%p3119_p8), %s3109_s11, 0 }
  0x79   : > { %245 = sbr.rel (%p3119_p8) target bundleno = 2077 (0x81d), region = 36  ;;  %s1709_s13 = sshll.u32 (!%p3119_p8), %s2895_s9, 7 }
  0x7a   : > { %s248_s29 = scalar_lea.sflag (!%p3119_p8), [#allocation3], %s2895_s9  ;;  %s2899_s14 = scalar_lea.vmem (!%p3119_p8), [#allocation2], %s1709_s13 }
  0x7e   : > { %2617 = dma.done.wait (%p3120_p11), %s248_s29, 2048  }
  0x7f   : > { %2619 = vsyncadd (%p3120_p11), %s248_s29, 4294965248  ;;  %s256_s26 = sand.u32 1, %s2773_s8   ;;  %s2906_s12 = scalar_lea.vmem [#allocation5], %s1709_s13 }
  0x80   : > { %s257_s7 = scalar_lea.sflag [#allocation6], %s256_s26 }
  0x81   : > { %2621 = dma.done.wait (%p3120_p11), %s257_s7, 2304  }
  0x82   : > { %2623 = vsyncadd (%p3120_p11), %s257_s7, 4294964992  ;;  %s1711_s1 = sshll.u32 %s2895_s9, 4  ;;  %p3121_p6 = scmp.eq.s32.totalorder %s2773_s8, 0 }
  0x83   : > { %s2915_s21 = scalar_lea.vmem [#allocation7], %s1711_s1 }
  0x84   : > { %2625 = dma.done.wait (%p3121_p6), [#allocation9], 15232   ;;  %p3122_p4 = pmov %p3121_p6 }
  0x85   : > { %v343_v0 = vld [vmem:[%s2906_s12 + $0x78] sm:$0xff]  ;;  %v342_v1 = vld [vmem:[%s2906_s12 + $0x70] sm:$0xff]  ;;  %v341_v2 = vld [vmem:[%s2906_s12 + $0x68] sm:$0xff]  ;;  %s307_s11 = scalar_lea.vmem [#allocation10], %s1711_s1  ;;  %s1722_s22 = sshll.u32 %s2773_s8, 8 }
  0x86   : > { %2627 = vsyncadd (%p3122_p4), [#allocation9], 4294952064  ;;  %1959 = vmatprep.subr.mxu0 %v343_v0  ;;  %v340_v3 = vld [vmem:[%s2906_s12 + $0x60] sm:$0xff]  ;;  %v339_v5 = vld [vmem:[%s2906_s12 + $0x58] sm:$0xff]  ;;  %s1569_s28 = sshll.u32 %s307_s11, 4  ;;  %s3046_s10 = scalar_lea.hbm %s3093_s4, %s1722_s22  ;;  %s3041_s28 = int_to_ptr.vmem [resolvable:$true] %s1569_s28 }
  0x87   : > { %1960 = vmatpush3.msra.mxu0 %v343_v0  ;;  %v2926_v4 = vld [vmem:[%s2899_s14] sm:$0xff]  ;;  %v338_v6 = vld [vmem:[%s2906_s12 + $0x50] sm:$0xff]  ;;  %v337_v7 = vld [vmem:[%s2906_s12 + $0x48] sm:$0xff]  ;;  %s1556_s27 = scalar_lea.sflag [#allocation4], %s2895_s9  ;;  %s2574_s24 = scalar_lea.vmem %s3041_s28, 256 }
  0x88   : > { %1961 = vmatprep.subr.mxu0 %v342_v1  ;;  %1991 = vmatprep.mubr.f32.mxu0 %v2926_v4  ;;  %v506_v8 = vld [vmem:[#allocation8 + $0x78] sm:$0xff]  ;;  %v505_v9 = vld [vmem:[#allocation8 + $0x70] sm:$0xff]  ;;  %v336_v10 = vld [vmem:[%s2906_s12 + $0x40] sm:$0xff]  ;;  %p2575_p3 = scmp.ne.s32.totalorder %s3041_s28, %s2574_s24  ;;  %p3123_p13 = scmp.ne.s32.totalorder %s3111_s30, 0 }
  0x89   : > { %1962 = vmatpush3.msra.mxu0 %v342_v1  ;;  %2015 = vmatprep.subr.mxu1 %v506_v8  ;;  %v504_v11 = vld [vmem:[#allocation8 + $0x68] sm:$0xff]  ;;  %v335_v12 = vld [vmem:[%s2906_s12 + $0x38] sm:$0xff]  ;;  %v503_v13 = vld [vmem:[#allocation8 + $0x60] sm:$0xff]  ;;  %s2654_s8 = smov [#allocation10]  }
  0x8a   : > { %1963 = vmatprep.subr.mxu0 %v341_v2  ;;  %2016 = vmatpush3.msra.mxu1 %v506_v8  ;;  %v334_v14 = vld [vmem:[%s2906_s12 + $0x30] sm:$0xff]  ;;  %v502_v15 = vld [vmem:[#allocation8 + $0x58] sm:$0xff]  ;;  %v333_v16 = vld [vmem:[%s2906_s12 + $0x28] sm:$0xff]  ;;  %p2576_p1 = pnand %p2575_p3, %p3123_p13  ;;  %s2578_s25 = sshll.u32 %s2654_s8, 4  ;;  %s2579_s25 = int_to_ptr.vmem [resolvable:$false] %s2578_s25 }
  0x8b   : > { %1964 = vmatpush3.msra.mxu0 %v341_v2  ;;  %2017 = vmatprep.subr.mxu1 %v505_v9  ;;  %v501_v17 = vld [vmem:[#allocation8 + $0x50] sm:$0xff]  ;;  %v332_v18 = vld [vmem:[%s2906_s12 + $0x20] sm:$0xff]  ;;  %v500_v19 = vld [vmem:[#allocation8 + $0x48] sm:$0xff]  ;;  %s2580_s20 = scalar_lea.vmem %s2579_s25, 512  ;;  %p2581_p2 = scmp.lt.s32.totalorder %s3041_s28, %s2579_s25 }
  0x8c   : > { %1965 = vmatprep.subr.mxu0 %v340_v3  ;;  %2018 = vmatpush3.msra.mxu1 %v505_v9  ;;  %v331_v20 = vld [vmem:[%s2906_s12 + $0x18] sm:$0xff]  ;;  %v499_v21 = vld [vmem:[#allocation8 + $0x40] sm:$0xff]  ;;  %v330_v22 = vld [vmem:[%s2906_s12 + $0x10] sm:$0xff]  ;;  %p2577_p12 = pneg %p2576_p1  ;;  %p2582_p7 = scmp.lt.s32.totalorder %s2580_s20, %s2574_s24 }
  0x8d   : > { %1966 = vmatpush3.msra.mxu0 %v340_v3  ;;  %2019 = vmatprep.subr.mxu1 %v504_v11  ;;  %v498_v23 = vld [vmem:[#allocation8 + $0x38] sm:$0xff]  ;;  %v329_v24 = vld [vmem:[%s2906_s12 + $0x8] sm:$0xff]  ;;  %v497_v25 = vld [vmem:[#allocation8 + $0x30] sm:$0xff] }
  0x8e   : > { %1967 = vmatprep.subr.mxu0 %v339_v5  ;;  %2020 = vmatpush3.msra.mxu1 %v504_v11  ;;  %v328_v26 = vld [vmem:[%s2906_s12] sm:$0xff]  ;;  %v496_v27 = vld [vmem:[#allocation8 + $0x28] sm:$0xff]  ;;  %v2945_v30 = vld [vmem:[%s2899_s14 + $0x10] sm:$0xff]  ;;  %p2583_p0 = por %p2582_p7, %p2581_p2 }
  0x8f   : > { %1968 = vmatpush3.msra.mxu0 %v339_v5  ;;  %2021 = vmatprep.subr.mxu1 %v503_v13  ;;  %v2942_v28 = vld [vmem:[%s2899_s14 + $0x8] sm:$0xff]  ;;  %v495_v29 = vld [vmem:[#allocation8 + $0x20] sm:$0xff]  ;;  %v494_v31 = vld [vmem:[#allocation8 + $0x18] sm:$0xff] }
  0x90   : > { %1969 = vmatprep.subr.mxu0 %v338_v6  ;;  %2022 = vmatpush3.msra.mxu1 %v503_v13  ;;  %v2950_v32 = vld [vmem:[%s2899_s14 + $0x18] sm:$0xff]  ;;  %v493_v33 = vld [vmem:[#allocation8 + $0x10] sm:$0xff]  ;;  %v2953_v34 = vld [vmem:[%s2899_s14 + $0x20] sm:$0xff]  ;;  %p2584_p5 = pnand %p2583_p0, %p2577_p12 }
  0x91   : > { %1970 = vmatpush3.msra.mxu0 %v338_v6  ;;  %2023 = vmatprep.subr.mxu1 %v502_v15  ;;  %v2958_v35 = vld [vmem:[%s2899_s14 + $0x28] sm:$0xff]  ;;  %v2961_v36 = vld [vmem:[%s2899_s14 + $0x30] sm:$0xff]  ;;  %v2966_v37 = vld [vmem:[%s2899_s14 + $0x38] sm:$0xff] }
  0x92   : > { %1971 = vmatprep.subr.mxu0 %v337_v7  ;;  %2024 = vmatpush3.msra.mxu1 %v502_v15  ;;  %v2969_v38 = vld [vmem:[%s2899_s14 + $0x40] sm:$0xff]  ;;  %v2974_v39 = vld [vmem:[%s2899_s14 + $0x48] sm:$0xff]  ;;  %v2977_v40 = vld [vmem:[%s2899_s14 + $0x50] sm:$0xff] }
  0x93   : > { %1972 = vmatpush3.msra.mxu0 %v337_v7  ;;  %2025 = vmatprep.subr.mxu1 %v501_v17  ;;  %v2982_v41 = vld [vmem:[%s2899_s14 + $0x58] sm:$0xff]  ;;  %v2985_v42 = vld [vmem:[%s2899_s14 + $0x60] sm:$0xff]  ;;  %v2990_v43 = vld [vmem:[%s2899_s14 + $0x68] sm:$0xff] }
  0x94   : > { %1973 = vmatprep.subr.mxu0 %v336_v10  ;;  %2026 = vmatpush3.msra.mxu1 %v501_v17  ;;  %v2993_v44 = vld [vmem:[%s2899_s14 + $0x70] sm:$0xff]  ;;  %v2998_v45 = vld [vmem:[%s2899_s14 + $0x78] sm:$0xff]  ;;  %v492_v46 = vld [vmem:[#allocation8 + $0x8] sm:$0xff] }
  0x95   : > { %1974 = vmatpush3.msra.mxu0 %v336_v10  ;;  %2027 = vmatprep.subr.mxu1 %v500_v19  ;;  %v491_v47 = vld [vmem:[#allocation8] sm:$0xff]  ;;  %v832_v1 = vld [vmem:[#allocation8 + $0xf8] sm:$0xff]  ;;  %v831_v2 = vld [vmem:[#allocation8 + $0xf0] sm:$0xff] }
  0x96   : > { %1975 = vmatprep.subr.mxu0 %v335_v12  ;;  %2028 = vmatpush3.msra.mxu1 %v500_v19  ;;  %v833_v0 = vld [vmem:[#allocation8 + $0x100] sm:$0xff]  ;;  %v830_v3 = vld [vmem:[#allocation8 + $0xe8] sm:$0xff]  ;;  %v828_v5 = vld [vmem:[#allocation8 + $0xd8] sm:$0xff] }
  0x97   : > { %1976 = vmatpush3.msra.mxu0 %v335_v12  ;;  %2029 = vmatprep.subr.mxu1 %v499_v21  ;;  %v827_v6 = vld [vmem:[#allocation8 + $0xd0] sm:$0xff]  ;;  %v826_v7 = vld [vmem:[#allocation8 + $0xc8] sm:$0xff]  ;;  %v825_v8 = vld [vmem:[#allocation8 + $0xc0] sm:$0xff] }
  0x98   : > { %1977 = vmatprep.subr.mxu0 %v334_v14  ;;  %2030 = vmatpush3.msra.mxu1 %v499_v21  ;;  %v824_v9 = vld [vmem:[#allocation8 + $0xb8] sm:$0xff]  ;;  %v823_v10 = vld [vmem:[#allocation8 + $0xb0] sm:$0xff]  ;;  %v822_v11 = vld [vmem:[#allocation8 + $0xa8] sm:$0xff] }
  0x99   : > { %1978 = vmatpush3.msra.mxu0 %v334_v14  ;;  %2031 = vmatprep.subr.mxu1 %v498_v23  ;;  %v821_v12 = vld [vmem:[#allocation8 + $0xa0] sm:$0xff]  ;;  %v820_v13 = vld [vmem:[#allocation8 + $0x98] sm:$0xff] }
  0x9a   : > { %1979 = vmatprep.subr.mxu0 %v333_v16  ;;  %2032 = vmatpush3.msra.mxu1 %v498_v23 }
  0x9b   : > { %1980 = vmatpush3.msra.mxu0 %v333_v16  ;;  %2033 = vmatprep.subr.mxu1 %v497_v25 }
  0x9c   : > { %1981 = vmatprep.subr.mxu0 %v332_v18  ;;  %2034 = vmatpush3.msra.mxu1 %v497_v25 }
  0x9d   : > { %1982 = vmatpush3.msra.mxu0 %v332_v18  ;;  %2035 = vmatprep.subr.mxu1 %v496_v27 }
  0x9e   : > { %1983 = vmatprep.subr.mxu0 %v331_v20  ;;  %2036 = vmatpush3.msra.mxu1 %v496_v27 }
  0x9f   : > { %1984 = vmatpush3.msra.mxu0 %v331_v20  ;;  %2037 = vmatprep.subr.mxu1 %v495_v29 }
  0xa0   : > { %1985 = vmatprep.subr.mxu0 %v330_v22  ;;  %2038 = vmatpush3.msra.mxu1 %v495_v29 }
  0xa1   : > { %1986 = vmatpush3.msra.mxu0 %v330_v22  ;;  %2039 = vmatprep.subr.mxu1 %v494_v31  ;;  %v508_v22 = vlaneseq }
  0xa2   : > { %1987 = vmatprep.subr.mxu0 %v329_v24  ;;  %2040 = vmatpush3.msra.mxu1 %v494_v31  ;;  %v507_v31 = vld [vmem:[#allocation8 + $0x80] sm:$0xff] }
  0xa3   : > { %1988 = vmatpush3.msra.mxu0 %v329_v24  ;;  %2041 = vmatprep.subr.mxu1 %v493_v33  ;;  %v509_v25 = vshrl.u32 %v508_v22, 7  ;;  %v1092_v22 = vld [vmem:[#allocation8 + $0x198] sm:$0xff] }
  0xa4   : > { %1989 = vmatprep.subr.mxu0 %v328_v26  ;;  %2042 = vmatpush3.msra.mxu1 %v493_v33 }
  0xa5   : > { %1990 = vmatpush3.msra.mxu0 %v328_v26  ;;  %2043 = vmatprep.subr.mxu1 %v492_v46  ;;  %v3006_v29 = vsub.s32 0, %v509_v25  ;;  %v1089_v25 = vld [vmem:[#allocation8 + $0x180] sm:$0xff] }
  0xa6   : > { %1992 = vmatmul.mubr.f32.vlgmr.msra.gmra.mxu0 %v2942_v28  ;;  %2044 = vmatpush3.msra.mxu1 %v492_v46 }
  0xa7   : > { %1994 = vmatprep.mubr.f32.mxu0 %v2945_v30  ;;  %2045 = vmatprep.subr.mxu1 %v491_v47 }
  0xa8   : > { %2046 = vmatpush3.msra.mxu1 %v491_v47  ;;  %v511_v47 = vrot.slane %v507_v31, %v3006_v29  ;;  %v1086_v31 = vld [vmem:[#allocation8 + $0x168] sm:$0xff] }
  0xa9   : > { %2127 = vmatprep.subr.mxu1 %v833_v0 }
  0xaa   : > { %1995 = vmatmul.mubr.f32.gmra.mxu0 %v2950_v32 }
  0xab   : > { %1997 = vmatprep.mubr.f32.mxu0 %v2953_v34 }
  0xae   : > { %1998 = vmatmul.mubr.f32.gmra.mxu0 %v2958_v35 }
  0xaf   : > { %2000 = vmatprep.mubr.f32.mxu0 %v2961_v36 }
  0xb2   : > { %2001 = vmatmul.mubr.f32.gmra.mxu0 %v2966_v37 }
  0xb3   : > { %2003 = vmatprep.mubr.f32.mxu0 %v2969_v38 }
  0xb6   : > { %2004 = vmatmul.mubr.f32.gmra.mxu0 %v2974_v39 }
  0xb7   : > { %2006 = vmatprep.mubr.f32.mxu0 %v2977_v40 }
  0xba   : > { %2007 = vmatmul.mubr.f32.gmra.mxu0 %v2982_v41 }
  0xbb   : > { %2009 = vmatprep.mubr.f32.mxu0 %v2985_v42 }
  0xbe   : > { %2010 = vmatmul.mubr.f32.gmra.mxu0 %v2990_v43 }
  0xbf   : > { %2012 = vmatprep.mubr.f32.mxu0 %v2993_v44 }
  0xc2   : > { %2013 = vmatmul.mubr.f32.gmra.mxu0 %v2998_v45 }
  0xc3   : > { %2103 = vmatprep.mubr.f32.mxu0 %v2926_v4  ;;  %v829_v4 = vld [vmem:[#allocation8 + $0xe0] sm:$0xff] }
 0x166   : > { %v1993_v48 = vpop.f32.mrf.mxu0 }
 0x168   : > { %v412_v49 = vpop.f32.mrf.mxu0 }
 0x169   : > { %2047 = vmatprep.mubr.f32.mxu1 %v412_v49 }
 0x16a   : > { %v1996_v50 = vpop.f32.mrf.mxu0  ;;  %2048 = vmatmul.mubr.f32.vlgmr.msra.gmra.mxu1 %v1993_v48 }
 0x16b   : > { %2128 = vmatpush3.msra.mxu1 %v833_v0 }
 0x16c   : > { %v422_v51 = vpop.f32.mrf.mxu0  ;;  %2129 = vmatprep.subr.mxu1 %v832_v1 }
 0x16d   : > { %2050 = vmatprep.mubr.f32.mxu1 %v422_v51  ;;  %2130 = vmatpush3.msra.mxu1 %v832_v1 }
 0x16e   : > { %v1999_v52 = vpop.f32.mrf.mxu0  ;;  %2051 = vmatmul.mubr.f32.gmra.mxu1 %v1996_v50  ;;  %2131 = vmatprep.subr.mxu1 %v831_v2 }
 0x16f   : > { %2132 = vmatpush3.msra.mxu1 %v831_v2 }
 0x170   : > { %v432_v53 = vpop.f32.mrf.mxu0  ;;  %2133 = vmatprep.subr.mxu1 %v830_v3 }
 0x171   : > { %2053 = vmatprep.mubr.f32.mxu1 %v432_v53  ;;  %2134 = vmatpush3.msra.mxu1 %v830_v3 }
 0x172   : > { %v2002_v54 = vpop.f32.mrf.mxu0  ;;  %2054 = vmatmul.mubr.f32.gmra.mxu1 %v1999_v52  ;;  %2135 = vmatprep.subr.mxu1 %v829_v4 }
 0x173   : > { %2136 = vmatpush3.msra.mxu1 %v829_v4 }
 0x174   : > { %v442_v55 = vpop.f32.mrf.mxu0  ;;  %2137 = vmatprep.subr.mxu1 %v828_v5 }
 0x175   : > { %2056 = vmatprep.mubr.f32.mxu1 %v442_v55  ;;  %2138 = vmatpush3.msra.mxu1 %v828_v5 }
 0x176   : > { %v2005_v56 = vpop.f32.mrf.mxu0  ;;  %2057 = vmatmul.mubr.f32.gmra.mxu1 %v2002_v54  ;;  %2139 = vmatprep.subr.mxu1 %v827_v6 }
 0x177   : > { %2140 = vmatpush3.msra.mxu1 %v827_v6 }
 0x178   : > { %v452_v57 = vpop.f32.mrf.mxu0  ;;  %2141 = vmatprep.subr.mxu1 %v826_v7 }
 0x179   : > { %2059 = vmatprep.mubr.f32.mxu1 %v452_v57  ;;  %2142 = vmatpush3.msra.mxu1 %v826_v7 }
 0x17a   : > { %v2008_v58 = vpop.f32.mrf.mxu0  ;;  %2060 = vmatmul.mubr.f32.gmra.mxu1 %v2005_v56  ;;  %2143 = vmatprep.subr.mxu1 %v825_v8 }
 0x17b   : > { %2144 = vmatpush3.msra.mxu1 %v825_v8 }
 0x17c   : > { %v462_v59 = vpop.f32.mrf.mxu0  ;;  %2145 = vmatprep.subr.mxu1 %v824_v9 }
 0x17d   : > { %2062 = vmatprep.mubr.f32.mxu1 %v462_v59  ;;  %2146 = vmatpush3.msra.mxu1 %v824_v9 }
 0x17e   : > { %v2011_v60 = vpop.f32.mrf.mxu0  ;;  %2063 = vmatmul.mubr.f32.gmra.mxu1 %v2008_v58  ;;  %2147 = vmatprep.subr.mxu1 %v823_v10 }
 0x17f   : > { %2148 = vmatpush3.msra.mxu1 %v823_v10 }
 0x180   : > { %v472_v61 = vpop.f32.mrf.mxu0  ;;  %2149 = vmatprep.subr.mxu1 %v822_v11 }
 0x181   : > { %2065 = vmatprep.mubr.f32.mxu1 %v472_v61  ;;  %2150 = vmatpush3.msra.mxu1 %v822_v11 }
 0x182   : > { %v2014_v62 = vpop.f32.mrf.mxu0  ;;  %2066 = vmatmul.mubr.f32.gmra.mxu1 %v2011_v60  ;;  %2151 = vmatprep.subr.mxu1 %v821_v12 }
 0x183   : > { %2152 = vmatpush3.msra.mxu1 %v821_v12 }
 0x184   : > { %v482_v63 = vpop.f32.mrf.mxu0  ;;  %2153 = vmatprep.subr.mxu1 %v820_v13 }
 0x185   : > { %2068 = vmatprep.mubr.f32.mxu1 %v482_v63  ;;  %2154 = vmatpush3.msra.mxu1 %v820_v13 }
 0x186   : > { %2069 = vmatmul.mubr.f32.gmra.mxu1 %v2014_v62 }
 0x22a   : > { %v3002_v14 = vpop.f32.mrf.mxu1 }
 0x22b   : > { %v584_v12 = vadd.f32 %v3002_v14, %v511_v47 }
 0x22c   : > { %v3004_v15 = vpop.f32.mrf.mxu1 }
 0x22e   : > { %v2052_v16 = vpop.f32.mrf.mxu1 }
 0x22f   : > { %v594_v8 = vadd.f32 %v2052_v16, %v511_v47 }
 0x230   : > { %v588_v17 = vpop.f32.mrf.mxu1 }
 0x231   : > { %v589_v10 = vadd.f32 %v588_v17, %v511_v47  ;;  %v660_v13 = vmax.f32 %v594_v8, 0.0 }
 0x232   : > { %v2055_v18 = vpop.f32.mrf.mxu1 }
 0x233   : > { %v604_v4 = vadd.f32 %v2055_v18, %v511_v47  ;;  %v579_v18 = vadd.f32 %v3004_v15, %v511_v47 }
 0x234   : > { %v598_v19 = vpop.f32.mrf.mxu1 }
 0x235   : > { %v599_v6 = vadd.f32 %v598_v19, %v511_v47  ;;  %v662_v9 = vmax.f32 %v604_v4, 0.0  ;;  %v658_v19 = vmax.f32 %v584_v12, 0.0  ;;  %v657_v16 = vmax.f32 %v579_v18, 0.0 }
 0x236   : > { %v2058_v20 = vpop.f32.mrf.mxu1 }
 0x237   : > { %v614_v0 = vadd.f32 %v2058_v20, %v511_v47  ;;  %v661_v11 = vmax.f32 %v599_v6, 0.0  ;;  %v659_v20 = vmax.f32 %v589_v10, 0.0 }
 0x238   : > { %v608_v21 = vpop.f32.mrf.mxu1 }
 0x239   : > { %v609_v2 = vadd.f32 %v608_v21, %v511_v47  ;;  %v664_v5 = vmax.f32 %v614_v0, 0.0  ;;  %v1000_v21 = vld [vmem:[#allocation8 + $0x110] sm:$0xff]  ;;  %v834_v0 = vld [vmem:[#allocation8 + $0x108] sm:$0xff] }
 0x23a   : > { %v2061_v23 = vpop.f32.mrf.mxu1 }
 0x23b   : > { %v624_v60 = vadd.f32 %v2061_v23, %v511_v47  ;;  %v663_v7 = vmax.f32 %v609_v2, 0.0  ;;  %v1091_v23 = vld [vmem:[#allocation8 + $0x190] sm:$0xff] }
 0x23c   : > { %v618_v24 = vpop.f32.mrf.mxu1 }
 0x23d   : > { %v619_v62 = vadd.f32 %v618_v24, %v511_v47  ;;  %v666_v1 = vmax.f32 %v624_v60, 0.0  ;;  %v1090_v24 = vld [vmem:[#allocation8 + $0x188] sm:$0xff] }
 0x23e   : > { %v2064_v26 = vpop.f32.mrf.mxu1 }
 0x23f   : > { %v634_v56 = vadd.f32 %v2064_v26, %v511_v47  ;;  %v665_v3 = vmax.f32 %v619_v62, 0.0  ;;  %v1088_v26 = vld [vmem:[#allocation8 + $0x178] sm:$0xff] }
 0x240   : > { %v628_v27 = vpop.f32.mrf.mxu1 }
 0x241   : > { %v629_v58 = vadd.f32 %v628_v27, %v511_v47  ;;  %v668_v61 = vmax.f32 %v634_v56, 0.0  ;;  %v1087_v27 = vld [vmem:[#allocation8 + $0x170] sm:$0xff] }
 0x242   : > { %v2067_v33 = vpop.f32.mrf.mxu1 }
 0x243   : > { %v644_v51 = vadd.f32 %v2067_v33, %v511_v47  ;;  %v667_v63 = vmax.f32 %v629_v58, 0.0  ;;  %v1085_v33 = vld [vmem:[#allocation8 + $0x160] sm:$0xff] }
 0x244   : > { %v638_v46 = vpop.f32.mrf.mxu1 }
 0x245   : > { %v639_v54 = vadd.f32 %v638_v46, %v511_v47  ;;  %v670_v57 = vmax.f32 %v644_v51, 0.0  ;;  %v1084_v46 = vld [vmem:[#allocation8 + $0x158] sm:$0xff]  ;;  %v1079_v51 = vld [vmem:[#allocation8 + $0x130] sm:$0xff] }
 0x246   : > { %v2070_v48 = vpop.f32.mrf.mxu1 }
 0x247   : > { %v654_v49 = vadd.f32 %v2070_v48, %v511_v47  ;;  %v669_v59 = vmax.f32 %v639_v54, 0.0  ;;  %v1082_v48 = vld [vmem:[#allocation8 + $0x148] sm:$0xff] }
 0x248   : > { %v648_v50 = vpop.f32.mrf.mxu1 }
 0x249   : > { %v672_v52 = vmax.f32 %v654_v49, 0.0  ;;  %v649_v53 = vadd.f32 %v648_v50, %v511_v47  ;;  %v1083_v47 = vld [vmem:[#allocation8 + $0x150] sm:$0xff]  ;;  %v1081_v49 = vld [vmem:[#allocation8 + $0x140] sm:$0xff]  ;;  %v1080_v50 = vld [vmem:[#allocation8 + $0x138] sm:$0xff] }
 0x24b   : > { %v671_v55 = vmax.f32 %v649_v53, 0.0  ;;  %2071 = vmatprep.subr.mxu0 %v672_v52 }
 0x24c   : > { %2072 = vmatpush3.msra.mxu0 %v672_v52 }
 0x24d   : > { %2073 = vmatprep.subr.mxu0 %v671_v55 }
 0x24e   : > { %2074 = vmatpush3.msra.mxu0 %v671_v55 }
 0x24f   : > { %2075 = vmatprep.subr.mxu0 %v670_v57 }
 0x250   : > { %2076 = vmatpush3.msra.mxu0 %v670_v57 }
 0x251   : > { %2077 = vmatprep.subr.mxu0 %v669_v59 }
 0x252   : > { %2078 = vmatpush3.msra.mxu0 %v669_v59 }
 0x253   : > { %2079 = vmatprep.subr.mxu0 %v668_v61 }
 0x254   : > { %2080 = vmatpush3.msra.mxu0 %v668_v61 }
 0x255   : > { %2081 = vmatprep.subr.mxu0 %v667_v63 }
 0x256   : > { %2082 = vmatpush3.msra.mxu0 %v667_v63 }
 0x257   : > { %2083 = vmatprep.subr.mxu0 %v666_v1 }
 0x258   : > { %2084 = vmatpush3.msra.mxu0 %v666_v1 }
 0x259   : > { %2085 = vmatprep.subr.mxu0 %v665_v3 }
 0x25a   : > { %2086 = vmatpush3.msra.mxu0 %v665_v3  ;;  %v838_v3 = vrot.slane %v834_v0, %v3006_v29  ;;  %v1274_v0 = vld [vmem:[#allocation8 + $0x288] sm:$0xff] }
 0x25b   : > { %2087 = vmatprep.subr.mxu0 %v664_v5 }
 0x25c   : > { %2088 = vmatpush3.msra.mxu0 %v664_v5 }
 0x25d   : > { %2089 = vmatprep.subr.mxu0 %v663_v7 }
 0x25e   : > { %2090 = vmatpush3.msra.mxu0 %v663_v7 }
 0x25f   : > { %2091 = vmatprep.subr.mxu0 %v662_v9 }
 0x260   : > { %2092 = vmatpush3.msra.mxu0 %v662_v9 }
 0x261   : > { %2093 = vmatprep.subr.mxu0 %v661_v11 }
 0x262   : > { %2094 = vmatpush3.msra.mxu0 %v661_v11 }
 0x263   : > { %2095 = vmatprep.subr.mxu0 %v660_v13 }
 0x264   : > { %2096 = vmatpush3.msra.mxu0 %v660_v13 }
 0x265   : > { %2097 = vmatprep.subr.mxu0 %v659_v20 }
 0x266   : > { %2098 = vmatpush3.msra.mxu0 %v659_v20 }
 0x267   : > { %2099 = vmatprep.subr.mxu0 %v658_v19 }
 0x268   : > { %2100 = vmatpush3.msra.mxu0 %v658_v19 }
 0x269   : > { %2101 = vmatprep.subr.mxu0 %v657_v16 }
 0x26a   : > { %2102 = vmatpush3.msra.mxu0 %v657_v16 }
 0x26b   : > { %2104 = vmatmul.mubr.f32.vlgmr.msra.gmra.mxu0 %v2942_v28  ;;  %v819_v28 = vld [vmem:[#allocation8 + $0x90] sm:$0xff] }
 0x26c   : > { %2106 = vmatprep.mubr.f32.mxu0 %v2945_v30  ;;  %2155 = vmatprep.subr.mxu1 %v819_v28  ;;  %v818_v30 = vld [vmem:[#allocation8 + $0x88] sm:$0xff] }
 0x26d   : > { %2156 = vmatpush3.msra.mxu1 %v819_v28 }
 0x26e   : > { %2157 = vmatprep.subr.mxu1 %v818_v30 }
 0x26f   : > { %2107 = vmatmul.mubr.f32.gmra.mxu0 %v2950_v32  ;;  %2158 = vmatpush3.msra.mxu1 %v818_v30 }
 0x270   : > { %2109 = vmatprep.mubr.f32.mxu0 %v2953_v34  ;;  %2218 = vmatprep.subr.mxu1 %v1092_v22 }
 0x273   : > { %2110 = vmatmul.mubr.f32.gmra.mxu0 %v2958_v35 }
 0x274   : > { %2112 = vmatprep.mubr.f32.mxu0 %v2961_v36 }
 0x277   : > { %2113 = vmatmul.mubr.f32.gmra.mxu0 %v2966_v37 }
 0x278   : > { %2115 = vmatprep.mubr.f32.mxu0 %v2969_v38 }
 0x27b   : > { %2116 = vmatmul.mubr.f32.gmra.mxu0 %v2974_v39 }
 0x27c   : > { %2118 = vmatprep.mubr.f32.mxu0 %v2977_v40 }
 0x27f   : > { %2119 = vmatmul.mubr.f32.gmra.mxu0 %v2982_v41 }
 0x280   : > { %2121 = vmatprep.mubr.f32.mxu0 %v2985_v42 }
 0x283   : > { %2122 = vmatmul.mubr.f32.gmra.mxu0 %v2990_v43 }
 0x284   : > { %2124 = vmatprep.mubr.f32.mxu0 %v2993_v44 }
 0x287   : > { %2125 = vmatmul.mubr.f32.gmra.mxu0 %v2998_v45 }
 0x288   : > { %2215 = vmatprep.mubr.f32.mxu0 %v1000_v21 }
 0x32b   : > { %v2105_v32 = vpop.f32.mrf.mxu0 }
 0x32d   : > { %v739_v34 = vpop.f32.mrf.mxu0 }
 0x32e   : > { %2159 = vmatprep.mubr.f32.mxu1 %v739_v34 }
 0x32f   : > { %v2108_v35 = vpop.f32.mrf.mxu0  ;;  %2160 = vmatmul.mubr.f32.vlgmr.msra.gmra.mxu1 %v2105_v32 }
 0x330   : > { %2219 = vmatpush3.msra.mxu1 %v1092_v22 }
 0x331   : > { %v749_v36 = vpop.f32.mrf.mxu0  ;;  %2220 = vmatprep.subr.mxu1 %v1091_v23 }
 0x332   : > { %2162 = vmatprep.mubr.f32.mxu1 %v749_v36  ;;  %2221 = vmatpush3.msra.mxu1 %v1091_v23  ;;  %v1001_v23 = vld [vmem:[#allocation8 + $0x118] sm:$0xff] }
 0x333   : > { %v2111_v37 = vpop.f32.mrf.mxu0  ;;  %2163 = vmatmul.mubr.f32.gmra.mxu1 %v2108_v35  ;;  %2222 = vmatprep.subr.mxu1 %v1090_v24 }
 0x334   : > { %2223 = vmatpush3.msra.mxu1 %v1090_v24  ;;  %v1183_v24 = vld [vmem:[#allocation8 + $0x218] sm:$0xff] }
 0x335   : > { %v759_v38 = vpop.f32.mrf.mxu0  ;;  %2224 = vmatprep.subr.mxu1 %v1089_v25 }
 0x336   : > { %2165 = vmatprep.mubr.f32.mxu1 %v759_v38  ;;  %2225 = vmatpush3.msra.mxu1 %v1089_v25  ;;  %v1182_v25 = vld [vmem:[#allocation8 + $0x210] sm:$0xff] }
 0x337   : > { %v2114_v39 = vpop.f32.mrf.mxu0  ;;  %2166 = vmatmul.mubr.f32.gmra.mxu1 %v2111_v37  ;;  %2226 = vmatprep.subr.mxu1 %v1088_v26 }
 0x338   : > { %2227 = vmatpush3.msra.mxu1 %v1088_v26  ;;  %v1181_v26 = vld [vmem:[#allocation8 + $0x208] sm:$0xff] }
 0x339   : > { %v769_v40 = vpop.f32.mrf.mxu0  ;;  %2228 = vmatprep.subr.mxu1 %v1087_v27 }
 0x33a   : > { %2168 = vmatprep.mubr.f32.mxu1 %v769_v40  ;;  %2229 = vmatpush3.msra.mxu1 %v1087_v27  ;;  %v1180_v27 = vld [vmem:[#allocation8 + $0x200] sm:$0xff] }
 0x33b   : > { %v2117_v41 = vpop.f32.mrf.mxu0  ;;  %2169 = vmatmul.mubr.f32.gmra.mxu1 %v2114_v39  ;;  %2230 = vmatprep.subr.mxu1 %v1086_v31 }
 0x33c   : > { %2231 = vmatpush3.msra.mxu1 %v1086_v31  ;;  %v1179_v31 = vld [vmem:[#allocation8 + $0x1f8] sm:$0xff] }
 0x33d   : > { %v779_v42 = vpop.f32.mrf.mxu0  ;;  %2232 = vmatprep.subr.mxu1 %v1085_v33 }
 0x33e   : > { %2171 = vmatprep.mubr.f32.mxu1 %v779_v42  ;;  %2233 = vmatpush3.msra.mxu1 %v1085_v33  ;;  %v1178_v33 = vld [vmem:[#allocation8 + $0x1f0] sm:$0xff] }
 0x33f   : > { %v2120_v43 = vpop.f32.mrf.mxu0  ;;  %2172 = vmatmul.mubr.f32.gmra.mxu1 %v2117_v41  ;;  %2234 = vmatprep.subr.mxu1 %v1084_v46 }
 0x340   : > { %2235 = vmatpush3.msra.mxu1 %v1084_v46  ;;  %v1177_v46 = vld [vmem:[#allocation8 + $0x1e8] sm:$0xff] }
 0x341   : > { %v789_v44 = vpop.f32.mrf.mxu0  ;;  %2236 = vmatprep.subr.mxu1 %v1083_v47 }
 0x342   : > { %2174 = vmatprep.mubr.f32.mxu1 %v789_v44  ;;  %2237 = vmatpush3.msra.mxu1 %v1083_v47  ;;  %v1176_v47 = vld [vmem:[#allocation8 + $0x1e0] sm:$0xff] }
 0x343   : > { %v2123_v45 = vpop.f32.mrf.mxu0  ;;  %2175 = vmatmul.mubr.f32.gmra.mxu1 %v2120_v43  ;;  %2238 = vmatprep.subr.mxu1 %v1082_v48 }
 0x344   : > { %2239 = vmatpush3.msra.mxu1 %v1082_v48  ;;  %v1175_v48 = vld [vmem:[#allocation8 + $0x1d8] sm:$0xff] }
 0x345   : > { %v799_v14 = vpop.f32.mrf.mxu0  ;;  %2240 = vmatprep.subr.mxu1 %v1081_v49 }
 0x346   : > { %2177 = vmatprep.mubr.f32.mxu1 %v799_v14  ;;  %2241 = vmatpush3.msra.mxu1 %v1081_v49  ;;  %v1174_v49 = vld [vmem:[#allocation8 + $0x1d0] sm:$0xff] }
 0x347   : > { %v2126_v15 = vpop.f32.mrf.mxu0  ;;  %2178 = vmatmul.mubr.f32.gmra.mxu1 %v2123_v45  ;;  %2242 = vmatprep.subr.mxu1 %v1080_v50 }
 0x348   : > { %2243 = vmatpush3.msra.mxu1 %v1080_v50  ;;  %v1173_v50 = vld [vmem:[#allocation8 + $0x1c8] sm:$0xff] }
 0x349   : > { %v809_v17 = vpop.f32.mrf.mxu0  ;;  %2244 = vmatprep.subr.mxu1 %v1079_v51 }
 0x34a   : > { %2180 = vmatprep.mubr.f32.mxu1 %v809_v17  ;;  %2245 = vmatpush3.msra.mxu1 %v1079_v51  ;;  %v1172_v51 = vld [vmem:[#allocation8 + $0x1c0] sm:$0xff] }
 0x34b   : > { %2181 = vmatmul.mubr.f32.gmra.mxu1 %v2126_v15 }
 0x3ef   : > { %v3026_v52 = vpop.f32.mrf.mxu1 }
 0x3f0   : > { %v911_v45 = vadd.f32 %v3026_v52, %v838_v3  ;;  %v1171_v52 = vld [vmem:[#allocation8 + $0x1b8] sm:$0xff] }
 0x3f1   : > { %v3028_v53 = vpop.f32.mrf.mxu1 }
 0x3f2   : > { %v906_v15 = vadd.f32 %v3028_v53, %v838_v3  ;;  %v985_v21 = vmax.f32 %v911_v45, 0.0  ;;  %v1170_v53 = vld [vmem:[#allocation8 + $0x1b0] sm:$0xff]  ;;  %v1362_v45 = vld [vmem:[#allocation8 + $0x2c0] sm:$0xff] }
 0x3f3   : > { %v2164_v54 = vpop.f32.mrf.mxu1 }
 0x3f4   : > { %v921_v41 = vadd.f32 %v2164_v54, %v838_v3  ;;  %v984_v22 = vmax.f32 %v906_v15, 0.0  ;;  %v1169_v54 = vld [vmem:[#allocation8 + $0x1a8] sm:$0xff]  ;;  %v1360_v15 = vld [vmem:[#allocation8 + $0x2b0] sm:$0xff] }
 0x3f5   : > { %v915_v55 = vpop.f32.mrf.mxu1 }
 0x3f6   : > { %v916_v43 = vadd.f32 %v915_v55, %v838_v3  ;;  %v987_v14 = vmax.f32 %v921_v41, 0.0  ;;  %v1078_v55 = vld [vmem:[#allocation8 + $0x128] sm:$0xff] }
 0x3f7   : > { %v2167_v56 = vpop.f32.mrf.mxu1  ;;  %2246 = vmatprep.subr.mxu1 %v1078_v55 }
 0x3f8   : > { %v931_v37 = vadd.f32 %v2167_v56, %v838_v3  ;;  %v986_v17 = vmax.f32 %v916_v43, 0.0  ;;  %v1168_v56 = vld [vmem:[#allocation8 + $0x1a0] sm:$0xff]  ;;  %2247 = vmatpush3.msra.mxu1 %v1078_v55 }
 0x3f9   : > { %v925_v57 = vpop.f32.mrf.mxu1 }
 0x3fa   : > { %v926_v39 = vadd.f32 %v925_v57, %v838_v3  ;;  %v989_v42 = vmax.f32 %v931_v37, 0.0  ;;  %v344_v57 = vld [vmem:[%s2915_s21] sm:$0xff] }
 0x3fb   : > { %v2170_v58 = vpop.f32.mrf.mxu1  ;;  %v1364_v37 = vld [vmem:[#allocation8 + $0x2d0] sm:$0xff] }
 0x3fc   : > { %v941_v32 = vadd.f32 %v2170_v58, %v838_v3  ;;  %v988_v44 = vmax.f32 %v926_v39, 0.0  ;;  %v1077_v58 = vld [vmem:[#allocation8 + $0x120] sm:$0xff] }
 0x3fd   : > { %v935_v59 = vpop.f32.mrf.mxu1  ;;  %2248 = vmatprep.subr.mxu1 %v1077_v58 }
 0x3fe   : > { %v936_v35 = vadd.f32 %v935_v59, %v838_v3  ;;  %v991_v38 = vmax.f32 %v941_v32, 0.0  ;;  %v345_v59 = vld [vmem:[%s2915_s21 + $0x8] sm:$0xff]  ;;  %2249 = vmatpush3.msra.mxu1 %v1077_v58  ;;  %v1368_v32 = vld [vmem:[#allocation8 + $0x2f0] sm:$0xff]  ;;  %v1459_v58 = vld [vmem:[#allocation8 + $0x340] sm:$0xff] }
 0x3ff   : > { %v2173_v60 = vpop.f32.mrf.mxu1 }
 0x400   : > { %v951_v19 = vadd.f32 %v2173_v60, %v838_v3  ;;  %v990_v40 = vmax.f32 %v936_v35, 0.0  ;;  %v1276_v60 = vld [vmem:[#allocation8 + $0x298] sm:$0xff]  ;;  %v1366_v35 = vld [vmem:[#allocation8 + $0x2e0] sm:$0xff] }
 0x401   : > { %v945_v61 = vpop.f32.mrf.mxu1  ;;  %2288 = vmatprep.subr.mxu1 %v1276_v60 }
 0x402   : > { %v946_v28 = vadd.f32 %v945_v61, %v838_v3  ;;  %v993_v34 = vmax.f32 %v951_v19, 0.0  ;;  %v1372_v19 = vld [vmem:[#allocation8 + $0x310] sm:$0xff] }
 0x403   : > { %v2176_v62 = vpop.f32.mrf.mxu1 }
 0x404   : > { %v961_v12 = vadd.f32 %v2176_v62, %v838_v3  ;;  %v992_v36 = vmax.f32 %v946_v28, 0.0  ;;  %v1370_v28 = vld [vmem:[#allocation8 + $0x300] sm:$0xff] }
 0x405   : > { %v955_v63 = vpop.f32.mrf.mxu1 }
 0x406   : > { %v956_v18 = vadd.f32 %v955_v63, %v838_v3  ;;  %v995_v16 = vmax.f32 %v961_v12, 0.0  ;;  %v1275_v63 = vld [vmem:[#allocation8 + $0x290] sm:$0xff]  ;;  %v1262_v12 = vld [vmem:[#allocation8 + $0x228] sm:$0xff] }
 0x407   : > { %v2179_v1 = vpop.f32.mrf.mxu1 }
 0x408   : > { %v971_v7 = vadd.f32 %v2179_v1, %v838_v3  ;;  %v994_v30 = vmax.f32 %v956_v18, 0.0  ;;  %v1273_v1 = vld [vmem:[#allocation8 + $0x280] sm:$0xff] }
 0x409   : > { %v965_v2 = vpop.f32.mrf.mxu1  ;;  %v1374_v18 = vld [vmem:[#allocation8 + $0x320] sm:$0xff] }
 0x40a   : > { %v966_v10 = vadd.f32 %v965_v2, %v838_v3  ;;  %v997_v13 = vmax.f32 %v971_v7, 0.0  ;;  %v1272_v2 = vld [vmem:[#allocation8 + $0x278] sm:$0xff]  ;;  %v1267_v7 = vld [vmem:[#allocation8 + $0x250] sm:$0xff] }
 0x40b   : > { %v2182_v4 = vpop.f32.mrf.mxu1 }
 0x40c   : > { %v981_v5 = vadd.f32 %v2182_v4, %v838_v3  ;;  %v996_v20 = vmax.f32 %v966_v10, 0.0  ;;  %v1270_v4 = vld [vmem:[#allocation8 + $0x268] sm:$0xff]  ;;  %v1264_v10 = vld [vmem:[#allocation8 + $0x238] sm:$0xff] }
 0x40d   : > { %v975_v6 = vpop.f32.mrf.mxu1 }
 0x40e   : > { %v999_v8 = vmax.f32 %v981_v5, 0.0  ;;  %v976_v9 = vadd.f32 %v975_v6, %v838_v3  ;;  %v1271_v3 = vld [vmem:[#allocation8 + $0x270] sm:$0xff]  ;;  %v1269_v5 = vld [vmem:[#allocation8 + $0x260] sm:$0xff]  ;;  %v1268_v6 = vld [vmem:[#allocation8 + $0x258] sm:$0xff] }
 0x410   : > { %v998_v11 = vmax.f32 %v976_v9, 0.0  ;;  %2183 = vmatprep.subr.mxu0 %v999_v8  ;;  %v1265_v9 = vld [vmem:[#allocation8 + $0x240] sm:$0xff] }
 0x411   : > { %2184 = vmatpush3.msra.mxu0 %v999_v8  ;;  %v1266_v8 = vld [vmem:[#allocation8 + $0x248] sm:$0xff] }
 0x412   : > { %2185 = vmatprep.subr.mxu0 %v998_v11 }
 0x413   : > { %2186 = vmatpush3.msra.mxu0 %v998_v11  ;;  %v1263_v11 = vld [vmem:[#allocation8 + $0x230] sm:$0xff] }
 0x414   : > { %2187 = vmatprep.subr.mxu0 %v997_v13 }
 0x415   : > { %2188 = vmatpush3.msra.mxu0 %v997_v13  ;;  %v1261_v13 = vld [vmem:[#allocation8 + $0x220] sm:$0xff] }
 0x416   : > { %2189 = vmatprep.subr.mxu0 %v996_v20 }
 0x417   : > { %2190 = vmatpush3.msra.mxu0 %v996_v20  ;;  %v1373_v20 = vld [vmem:[#allocation8 + $0x318] sm:$0xff] }
 0x418   : > { %2191 = vmatprep.subr.mxu0 %v995_v16 }
 0x419   : > { %2192 = vmatpush3.msra.mxu0 %v995_v16  ;;  %v1371_v16 = vld [vmem:[#allocation8 + $0x308] sm:$0xff] }
 0x41a   : > { %2193 = vmatprep.subr.mxu0 %v994_v30 }
 0x41b   : > { %2194 = vmatpush3.msra.mxu0 %v994_v30  ;;  %v1369_v30 = vld [vmem:[#allocation8 + $0x2f8] sm:$0xff] }
 0x41c   : > { %2195 = vmatprep.subr.mxu0 %v993_v34 }
 0x41d   : > { %2196 = vmatpush3.msra.mxu0 %v993_v34  ;;  %v1367_v34 = vld [vmem:[#allocation8 + $0x2e8] sm:$0xff] }
 0x41e   : > { %2197 = vmatprep.subr.mxu0 %v992_v36 }
 0x41f   : > { %2198 = vmatpush3.msra.mxu0 %v992_v36  ;;  %v1365_v36 = vld [vmem:[#allocation8 + $0x2d8] sm:$0xff] }
 0x420   : > { %2199 = vmatprep.subr.mxu0 %v991_v38 }
 0x421   : > { %2200 = vmatpush3.msra.mxu0 %v991_v38  ;;  %v1363_v38 = vld [vmem:[#allocation8 + $0x2c8] sm:$0xff] }
 0x422   : > { %2201 = vmatprep.subr.mxu0 %v990_v40 }
 0x423   : > { %2202 = vmatpush3.msra.mxu0 %v990_v40 }
 0x424   : > { %2203 = vmatprep.subr.mxu0 %v989_v42 }
 0x425   : > { %2204 = vmatpush3.msra.mxu0 %v989_v42 }
 0x426   : > { %2205 = vmatprep.subr.mxu0 %v988_v44 }
 0x427   : > { %2206 = vmatpush3.msra.mxu0 %v988_v44 }
 0x428   : > { %2207 = vmatprep.subr.mxu0 %v987_v14 }
 0x429   : > { %2208 = vmatpush3.msra.mxu0 %v987_v14  ;;  %v1361_v14 = vld [vmem:[#allocation8 + $0x2b8] sm:$0xff] }
 0x42a   : > { %2209 = vmatprep.subr.mxu0 %v986_v17 }
 0x42b   : > { %2210 = vmatpush3.msra.mxu0 %v986_v17  ;;  %v1359_v17 = vld [vmem:[#allocation8 + $0x2a8] sm:$0xff] }
 0x42c   : > { %2211 = vmatprep.subr.mxu0 %v985_v21 }
 0x42d   : > { %2212 = vmatpush3.msra.mxu0 %v985_v21  ;;  %v1472_v21 = vld [vmem:[#allocation8 + $0x3a8] sm:$0xff] }
 0x42e   : > { %2213 = vmatprep.subr.mxu0 %v984_v22 }
 0x42f   : > { %2214 = vmatpush3.msra.mxu0 %v984_v22  ;;  %v1471_v22 = vld [vmem:[#allocation8 + $0x3a0] sm:$0xff] }
 0x430   : > { %2216 = vmatmul.mubr.f32.vlgmr.msra.gmra.mxu0 %v1001_v23  ;;  %2253 = vmatprep.subr.mxu0 %v1183_v24  ;;  %v1470_v23 = vld [vmem:[#allocation8 + $0x398] sm:$0xff] }
 0x431   : > { %2254 = vmatpush3.msra.mxu0 %v1183_v24  ;;  %2285 = vmatprep.mubr.f32.mxu0 %v344_v57  ;;  %v1469_v24 = vld [vmem:[#allocation8 + $0x390] sm:$0xff]  ;;  %v1460_v57 = vld [vmem:[#allocation8 + $0x348] sm:$0xff] }
 0x432   : > { %2255 = vmatprep.subr.mxu0 %v1182_v25 }
 0x433   : > { %2256 = vmatpush3.msra.mxu0 %v1182_v25  ;;  %v1468_v25 = vld [vmem:[#allocation8 + $0x388] sm:$0xff] }
 0x434   : > { %2257 = vmatprep.subr.mxu0 %v1181_v26 }
 0x435   : > { %2258 = vmatpush3.msra.mxu0 %v1181_v26  ;;  %v1467_v26 = vld [vmem:[#allocation8 + $0x380] sm:$0xff] }
 0x436   : > { %2259 = vmatprep.subr.mxu0 %v1180_v27 }
 0x437   : > { %2260 = vmatpush3.msra.mxu0 %v1180_v27  ;;  %v1466_v27 = vld [vmem:[#allocation8 + $0x378] sm:$0xff] }
 0x438   : > { %2261 = vmatprep.subr.mxu0 %v1179_v31 }
 0x439   : > { %2262 = vmatpush3.msra.mxu0 %v1179_v31  ;;  %v1465_v31 = vld [vmem:[#allocation8 + $0x370] sm:$0xff] }
 0x43a   : > { %2263 = vmatprep.subr.mxu0 %v1178_v33 }
 0x43b   : > { %2264 = vmatpush3.msra.mxu0 %v1178_v33  ;;  %v1464_v33 = vld [vmem:[#allocation8 + $0x368] sm:$0xff] }
 0x43c   : > { %2265 = vmatprep.subr.mxu0 %v1177_v46 }
 0x43d   : > { %2266 = vmatpush3.msra.mxu0 %v1177_v46  ;;  %v1463_v46 = vld [vmem:[#allocation8 + $0x360] sm:$0xff] }
 0x43e   : > { %2267 = vmatprep.subr.mxu0 %v1176_v47 }
 0x43f   : > { %2268 = vmatpush3.msra.mxu0 %v1176_v47  ;;  %v1462_v47 = vld [vmem:[#allocation8 + $0x358] sm:$0xff] }
 0x440   : > { %2269 = vmatprep.subr.mxu0 %v1175_v48 }
 0x441   : > { %2270 = vmatpush3.msra.mxu0 %v1175_v48  ;;  %v1461_v48 = vld [vmem:[#allocation8 + $0x350] sm:$0xff] }
 0x442   : > { %2271 = vmatprep.subr.mxu0 %v1174_v49 }
 0x443   : > { %2272 = vmatpush3.msra.mxu0 %v1174_v49  ;;  %v1277_v49 = vld [vmem:[#allocation8 + $0x2a0] sm:$0xff] }
 0x444   : > { %2273 = vmatprep.subr.mxu0 %v1173_v50 }
 0x445   : > { %2274 = vmatpush3.msra.mxu0 %v1173_v50  ;;  %v1281_v50 = vrot.slane %v1277_v49, %v3006_v29 }
 0x446   : > { %2275 = vmatprep.subr.mxu0 %v1172_v51 }
 0x447   : > { %2276 = vmatpush3.msra.mxu0 %v1172_v51 }
 0x448   : > { %2277 = vmatprep.subr.mxu0 %v1171_v52 }
 0x449   : > { %2278 = vmatpush3.msra.mxu0 %v1171_v52 }
 0x44a   : > { %2279 = vmatprep.subr.mxu0 %v1170_v53 }
 0x44b   : > { %2280 = vmatpush3.msra.mxu0 %v1170_v53 }
 0x44c   : > { %2281 = vmatprep.subr.mxu0 %v1169_v54 }
 0x44d   : > { %2282 = vmatpush3.msra.mxu0 %v1169_v54 }
 0x44e   : > { %2283 = vmatprep.subr.mxu0 %v1168_v56 }
 0x44f   : > { %2284 = vmatpush3.msra.mxu0 %v1168_v56 }
 0x450   : > { %2286 = vmatmul.mubr.f32.vlgmr.msra.gmra.mxu0 %v345_v59  ;;  %2323 = vmatprep.subr.mxu0 %v1374_v18  ;;  %v1458_v59 = vld [vmem:[#allocation8 + $0x338] sm:$0xff] }
 0x451   : > { %2324 = vmatpush3.msra.mxu0 %v1374_v18 }
 0x452   : > { %2325 = vmatprep.subr.mxu0 %v1373_v20 }
 0x453   : > { %2326 = vmatpush3.msra.mxu0 %v1373_v20 }
 0x454   : > { %2327 = vmatprep.subr.mxu0 %v1372_v19 }
 0x455   : > { %2328 = vmatpush3.msra.mxu0 %v1372_v19 }
 0x456   : > { %2329 = vmatprep.subr.mxu0 %v1371_v16 }
 0x457   : > { %2330 = vmatpush3.msra.mxu0 %v1371_v16 }
 0x458   : > { %2331 = vmatprep.subr.mxu0 %v1370_v28 }
 0x459   : > { %2332 = vmatpush3.msra.mxu0 %v1370_v28 }
 0x45a   : > { %2333 = vmatprep.subr.mxu0 %v1369_v30 }
 0x45b   : > { %2334 = vmatpush3.msra.mxu0 %v1369_v30 }
 0x45c   : > { %2335 = vmatprep.subr.mxu0 %v1368_v32 }
 0x45d   : > { %2336 = vmatpush3.msra.mxu0 %v1368_v32 }
 0x45e   : > { %2337 = vmatprep.subr.mxu0 %v1367_v34 }
 0x45f   : > { %2338 = vmatpush3.msra.mxu0 %v1367_v34 }
 0x460   : > { %2339 = vmatprep.subr.mxu0 %v1366_v35 }
 0x461   : > { %2340 = vmatpush3.msra.mxu0 %v1366_v35 }
 0x462   : > { %2341 = vmatprep.subr.mxu0 %v1365_v36 }
 0x463   : > { %2342 = vmatpush3.msra.mxu0 %v1365_v36 }
 0x464   : > { %2343 = vmatprep.subr.mxu0 %v1364_v37 }
 0x465   : > { %2344 = vmatpush3.msra.mxu0 %v1364_v37 }
 0x466   : > { %2345 = vmatprep.subr.mxu0 %v1363_v38 }
 0x467   : > { %2346 = vmatpush3.msra.mxu0 %v1363_v38 }
 0x468   : > { %2347 = vmatprep.subr.mxu0 %v1362_v45 }
 0x469   : > { %2348 = vmatpush3.msra.mxu0 %v1362_v45 }
 0x46a   : > { %2349 = vmatprep.subr.mxu0 %v1361_v14 }
 0x46b   : > { %2350 = vmatpush3.msra.mxu0 %v1361_v14 }
 0x46c   : > { %2351 = vmatprep.subr.mxu0 %v1360_v15 }
 0x46d   : > { %2352 = vmatpush3.msra.mxu0 %v1360_v15 }
 0x46e   : > { %2353 = vmatprep.subr.mxu0 %v1359_v17 }
 0x46f   : > { %2354 = vmatpush3.msra.mxu0 %v1359_v17 }
 0x4f0   : > { %v2217_v61 = vpop.f32.mrf.mxu0 }
 0x4f2   : > { %v1068_v62 = vpop.f32.mrf.mxu0 }
 0x4f3   : > { %2250 = vmatprep.mubr.f32.mxu1 %v1068_v62 }
 0x4f4   : > { %2251 = vmatmul.mubr.f32.vlgmr.msra.gmra.mxu1 %v2217_v61  ;;  %v1375_v61 = vld [vmem:[#allocation8 + $0x328] sm:$0xff] }
 0x4f5   : > { %2289 = vmatpush3.msra.mxu1 %v1276_v60  ;;  %v1457_v60 = vld [vmem:[#allocation8 + $0x330] sm:$0xff]  ;;  %v1379_v62 = vrot.slane %v1375_v61, %v3006_v29 }
 0x4f6   : > { %2290 = vmatprep.subr.mxu1 %v1275_v63 }
 0x4f7   : > { %2291 = vmatpush3.msra.mxu1 %v1275_v63 }
 0x4f8   : > { %2292 = vmatprep.subr.mxu1 %v1274_v0 }
 0x4f9   : > { %2293 = vmatpush3.msra.mxu1 %v1274_v0 }
 0x4fa   : > { %2294 = vmatprep.subr.mxu1 %v1273_v1 }
 0x4fb   : > { %2295 = vmatpush3.msra.mxu1 %v1273_v1 }
 0x4fc   : > { %2296 = vmatprep.subr.mxu1 %v1272_v2 }
 0x4fd   : > { %2297 = vmatpush3.msra.mxu1 %v1272_v2 }
 0x4fe   : > { %2298 = vmatprep.subr.mxu1 %v1271_v3 }
 0x4ff   : > { %2299 = vmatpush3.msra.mxu1 %v1271_v3 }
 0x500   : > { %2300 = vmatprep.subr.mxu1 %v1270_v4 }
 0x501   : > { %2301 = vmatpush3.msra.mxu1 %v1270_v4 }
 0x502   : > { %2302 = vmatprep.subr.mxu1 %v1269_v5 }
 0x503   : > { %2303 = vmatpush3.msra.mxu1 %v1269_v5  ;;  %v1473_v5 = vld [vmem:[#allocation8 + $0x3b0] sm:$0xff] }
 0x504   : > { %2304 = vmatprep.subr.mxu1 %v1268_v6 }
 0x505   : > { %2305 = vmatpush3.msra.mxu1 %v1268_v6  ;;  %v1477_v6 = vrot.slane %v1473_v5, %v3006_v29 }
 0x506   : > { %2306 = vmatprep.subr.mxu1 %v1267_v7 }
 0x507   : > { %2307 = vmatpush3.msra.mxu1 %v1267_v7 }
 0x508   : > { %2308 = vmatprep.subr.mxu1 %v1266_v8 }
 0x509   : > { %2309 = vmatpush3.msra.mxu1 %v1266_v8 }
 0x50a   : > { %2310 = vmatprep.subr.mxu1 %v1265_v9 }
 0x50b   : > { %2311 = vmatpush3.msra.mxu1 %v1265_v9 }
 0x50c   : > { %2312 = vmatprep.subr.mxu1 %v1264_v10 }
 0x50d   : > { %2313 = vmatpush3.msra.mxu1 %v1264_v10 }
 0x50e   : > { %2314 = vmatprep.subr.mxu1 %v1263_v11 }
 0x50f   : > { %2315 = vmatpush3.msra.mxu1 %v1263_v11 }
 0x510   : > { %2316 = vmatprep.subr.mxu1 %v1262_v12  ;;  %v2287_v39 = vpop.f32.mrf.mxu0 }
 0x511   : > { %2317 = vmatpush3.msra.mxu1 %v1262_v12 }
 0x512   : > { %2318 = vmatprep.subr.mxu1 %v1261_v13  ;;  %v1250_v41 = vpop.f32.mrf.mxu0 }
 0x513   : > { %2319 = vmatpush3.msra.mxu1 %v1261_v13 }
 0x514   : > { %2358 = vmatprep.subr.mxu1 %v1472_v21 }
 0x5b4   : > { %v2252_v40 = vpop.f32.mrf.mxu1 }
 0x5b5   : > { %v1260_v44 = vmul.f32 %v2287_v39, %v2252_v40 }
 0x5b6   : > { %v1159_v42 = vpop.f32.mrf.mxu1 }
 0x5b7   : > { %v1259_v43 = vmul.f32 %v1250_v41, %v1159_v42 }
 0x5b9   : > { %2320 = vmatprep.mubr.f32.mxu1 %v1259_v43 }
 0x5ba   : > { %2321 = vmatmul.mubr.f32.vlgmr.msra.gmra.mxu1 %v1260_v44 }
 0x5bb   : > { %2359 = vmatpush3.msra.mxu1 %v1472_v21 }
 0x5bc   : > { %2360 = vmatprep.subr.mxu1 %v1471_v22 }
 0x5bd   : > { %2361 = vmatpush3.msra.mxu1 %v1471_v22 }
 0x5be   : > { %2362 = vmatprep.subr.mxu1 %v1470_v23 }
 0x5bf   : > { %2363 = vmatpush3.msra.mxu1 %v1470_v23 }
 0x5c0   : > { %2364 = vmatprep.subr.mxu1 %v1469_v24 }
 0x5c1   : > { %2365 = vmatpush3.msra.mxu1 %v1469_v24 }
 0x5c2   : > { %2366 = vmatprep.subr.mxu1 %v1468_v25 }
 0x5c3   : > { %2367 = vmatpush3.msra.mxu1 %v1468_v25 }
 0x5c4   : > { %2368 = vmatprep.subr.mxu1 %v1467_v26 }
 0x5c5   : > { %2369 = vmatpush3.msra.mxu1 %v1467_v26 }
 0x5c6   : > { %2370 = vmatprep.subr.mxu1 %v1466_v27 }
 0x5c7   : > { %2371 = vmatpush3.msra.mxu1 %v1466_v27 }
 0x5c8   : > { %2372 = vmatprep.subr.mxu1 %v1465_v31 }
 0x5c9   : > { %2373 = vmatpush3.msra.mxu1 %v1465_v31 }
 0x5ca   : > { %2374 = vmatprep.subr.mxu1 %v1464_v33 }
 0x5cb   : > { %2375 = vmatpush3.msra.mxu1 %v1464_v33 }
 0x5cc   : > { %2376 = vmatprep.subr.mxu1 %v1463_v46 }
 0x5cd   : > { %2377 = vmatpush3.msra.mxu1 %v1463_v46 }
 0x5ce   : > { %2378 = vmatprep.subr.mxu1 %v1462_v47 }
 0x5cf   : > { %2379 = vmatpush3.msra.mxu1 %v1462_v47 }
 0x5d0   : > { %2380 = vmatprep.subr.mxu1 %v1461_v48 }
 0x5d1   : > { %2381 = vmatpush3.msra.mxu1 %v1461_v48 }
 0x5d2   : > { %2382 = vmatprep.subr.mxu1 %v1460_v57 }
 0x5d3   : > { %2383 = vmatpush3.msra.mxu1 %v1460_v57 }
 0x5d4   : > { %2384 = vmatprep.subr.mxu1 %v1459_v58 }
 0x5d5   : > { %2385 = vmatpush3.msra.mxu1 %v1459_v58 }
 0x5d6   : > { %2386 = vmatprep.subr.mxu1 %v1458_v59 }
 0x5d7   : > { %2387 = vmatpush3.msra.mxu1 %v1458_v59 }
 0x5d8   : > { %2388 = vmatprep.subr.mxu1 %v1457_v60 }
 0x5d9   : > { %2389 = vmatpush3.msra.mxu1 %v1457_v60 }
 0x67a   : > { %v2322_v51 = vpop.f32.mrf.mxu1 }
 0x67b   : > { %v1354_v52 = vadd.f32 %v2322_v51, %v1281_v50 }
 0x67c   : > { %v1348_v53 = vpop.f32.mrf.mxu1 }
 0x67d   : > { %v1349_v54 = vadd.f32 %v1348_v53, %v1281_v50  ;;  %v1358_v56 = vmax.f32 %v1354_v52, 0.0 }
 0x67f   : > { %v1357_v55 = vmax.f32 %v1349_v54, 0.0 }
 0x681   : > { %2355 = vmatprep.mubr.f32.mxu0 %v1357_v55 }
 0x682   : > { %2356 = vmatmul.mubr.f32.vlgmr.msra.gmra.mxu0 %v1358_v56 }
 0x742   : > { %v2357_v63 = vpop.f32.mrf.mxu0 }
 0x743   : > { %v1452_v0 = vadd.f32 %v2357_v63, %v1379_v62 }
 0x744   : > { %v1446_v1 = vpop.f32.mrf.mxu0 }
 0x745   : > { %v1447_v2 = vadd.f32 %v1446_v1, %v1379_v62  ;;  %v1456_v4 = vmax.f32 %v1452_v0, 0.0 }
 0x747   : > { %v1455_v3 = vmax.f32 %v1447_v2, 0.0 }
 0x749   : > { %2390 = vmatprep.mubr.f32.mxu1 %v1455_v3 }
 0x74a   : > { %2391 = vmatmul.mubr.f32.vlgmr.msra.gmra.mxu1 %v1456_v4 }
 0x80a   : > { %v2392_v7 = vpop.f32.mrf.mxu1 }
 0x80b   : > { %v1550_v8 = vadd.f32 %v2392_v7, %v1477_v6 }
 0x80c   : > { %v1544_v9 = vpop.f32.mrf.mxu1 }
 0x80d   : > { %1554 = vst [vmem:[%s307_s11 + $0x8] sm:$0xff] %v1550_v8  ;;  %v1545_v10 = vadd.f32 %v1544_v9, %v1477_v6 }
 0x80f   : > { %1553 = vst [vmem:[%s307_s11] sm:$0xff] %v1545_v10 }
 0x810   : > { %2587 = shalt.err (!%p2584_p5)
}
 0x811   : > { %s2588_s13 = scalar_lea.hbm %s3046_s10, 256  ;;  %s2592_s26 = scalar_lea.hbm %s3093_s4, 512 }
 0x812   : > { %p2589_p9 = scmp.ne.s32.totalorder %s3046_s10, %s2588_s13  ;;  %p2593_p11 = scmp.lt.s32.totalorder %s3046_s10, %s3093_s4 }
 0x813   : > { %p2594_p6 = scmp.lt.s32.totalorder %s2592_s26, %s2588_s13 }
 0x814   : > { %p2590_p10 = pnand %p2589_p9, %p3123_p13 }
 0x815   : > { %p2595_p4 = por %p2594_p6, %p2593_p11 }
 0x816   : > { %p2591_p8 = pneg %p2590_p10 }
 0x818   : > { %p2596_p3 = pnand %p2595_p4, %p2591_p8 }
 0x81a   : > { %2599 = shalt.err (!%p2596_p3)
}
 0x81b   : > { %s2655_s1 = smov 128   ;;  %s2656_s21 = smov 8  }
 0x81c   : > { %2403 = dma.vmem_to_hbm [thread:$0]  (%p3123_p13), %s3041_s28, 256, %s3046_s10, %s1556_s27, %s2655_s1, %s2655_s1, %s2656_s21  }
 0x81d PF: > { %s1584_s11 = sand.u32 1, %s2634_s15   ;;  %p3124_p1 = scmp.ne.s32.totalorder %s3112_s6, 0 }
 0x81e   : > { %p3125_p12 = scmp.ge.s32.totalorder %s2646_s18, 2  ;;  %s1585_s22 = scalar_lea.sflag [#allocation4], %s1584_s11 }
 0x820   : > { %p2420_p2 = pnand %p3125_p12, %p3124_p1 }
 0x822   : > { %p2421_p7 = pneg %p2420_p2 }
 0x824   : > { %2629 = dma.done.wait (%p2421_p7), %s1585_s22, 256  }
 0x825   : > { %2631 = vsyncadd (%p2421_p7), %s1585_s22, 4294967040  ;;  %s3126_s23 = sld [smem:[#allocation15_spill]]  ;;  %p21_p0 = scmp.ge.s32.totalorder %s2703_s19, 4  }
 0x826   : > { %s3127_s15 = smov %s2638_s16  ;;  %s3128_s16 = smov %s2642_s17 }
 0x827   : > { %s3130_s18 = smov %s2703_s19  ;;  %23 = sbr.rel (!%p21_p0) target bundleno = 10 (0xa), region = 109 }
 0x82b   : > { %s3129_s17 = smov %s3126_s23 }
 0x82c   :  { %1590 = vsyncpa [#allocation3], 1 }
 0x82d   :  { %1592 = vsyncpa [#allocation3 + $0x1], 1 }
 0x82e   :  { %1593 = vsyncpa [#allocation6], 1 }
 0x82f   :  { %1595 = vsyncpa [#allocation6 + $0x1], 1 }
 0x830   :  { %1596 = vsyncpa [#allocation9], 1 }
 0x831   :  { %1597 = vsyncpa [#allocation4], 1 }
 0x832   :  { %1599 = vsyncpa [#allocation4 + $0x1], 1 }

</bundles_post_ra>
